<compile_context>
chip_gen: v7x
topology: tpu7x:2x2x1
jax: 0.10.0
libtpu: 0.0.40
codegen_flags: <defaults>
</compile_context>

<pallas_src>
import functools

import jax
import jax.numpy as jnp
from jax import lax
from jax.experimental import pallas as pl
from jax.experimental.pallas import tpu as pltpu


def _round_up(v, m):
    return (v + m - 1) // m * m


# ----------------------------------------------------------------------------
# One grid step = one (direction, time-chunk).  Inside: fused input projection
# for the chunk, then a T-step recurrence carried through VMEM scratch.
#
# x_ref   : (T*Bp, Inp)      chunk of the layer input (compute dtype)
# wih_ref : (Inp, 4*Hp)      input weight (per direction, compute dtype)
# whh_ref : (Hp, 4*Hp)       recurrent weight (per direction, compute dtype)
# b_ref   : (1, 4*Hp)        b_ih + b_hh (f32)
# out_ref : (T*Bp, Hp)       per-step hidden states for this chunk
# hn/cn   : (Bp, Hp)         final hidden / cell state (f32)
# gbuf    : (T*Bp, 4*Hp) f32 scratch: precomputed x@W_ih + b for the chunk
# h_s/c_s : (Bp, Hp) f32     scratch: recurrent carry across chunks
# PyTorch gate order along the packed 4*Hp axis is (i, f, g, o).
# ----------------------------------------------------------------------------
def _lstm_chunk_kernel(x_ref, wih_ref, whh_ref, b_ref,
                       out_ref, hn_ref, cn_ref,
                       gbuf, h_s, c_s, *,
                       chunk_t, batch_p, hidden_p, seq_len, nchunks, unroll):
    T, Bp, Hp = chunk_t, batch_p, hidden_p
    d = pl.program_id(0)                        # direction: 0 = fwd, 1 = bwd
    c = pl.program_id(1)                        # pipeline step over chunks
    chunk = c + d * (nchunks - 1 - 2 * c)       # data chunk handled this step

    @pl.when(c == 0)
    def _init():
        h_s[...] = jnp.zeros_like(h_s)
        c_s[...] = jnp.zeros_like(c_s)

    # Fused input projection for the whole chunk: one M = T*Bp MXU matmul,
    # off the serial recurrence path.  Accumulate + bias in f32.
    gbuf[...] = jnp.dot(x_ref[...], wih_ref[...],
                        preferred_element_type=jnp.float32) + b_ref[...]

    w_hh = whh_ref[...]                         # loaded once per chunk

    def step(t, carry):
        h_prev, c_prev = carry
        local = t + d * (T - 1 - 2 * t)         # fwd: t ; bwd: T-1-t
        row = pl.multiple_of(local * Bp, Bp)    # sublane-aligned chunk row
        gates = gbuf[pl.ds(row, Bp), :] + jnp.dot(
            h_prev.astype(w_hh.dtype), w_hh,
            preferred_element_type=jnp.float32)
        # Hp is a multiple of 128 -> all gate slices are lane-aligned.
        i_g = jax.nn.sigmoid(gates[:, 0 * Hp:1 * Hp])
        f_g = jax.nn.sigmoid(gates[:, 1 * Hp:2 * Hp])
        g_g = jnp.tanh(gates[:, 2 * Hp:3 * Hp])
        o_g = jax.nn.sigmoid(gates[:, 3 * Hp:4 * Hp])
        c_new = f_g * c_prev + i_g * g_g
        h_new = o_g * jnp.tanh(c_new)
        # Steps in the zero-padded tail of the sequence must not perturb the
        # carried state (fwd: tail processed last; bwd: tail processed first).
        valid = (chunk * T + local) < seq_len
        c_new = jnp.where(valid, c_new, c_prev)
        h_new = jnp.where(valid, h_new, h_prev)
        out_ref[pl.ds(row, Bp), :] = h_new.astype(out_ref.dtype)
        return h_new, c_new

    h_fin, c_fin = lax.fori_loop(0, T, step, (h_s[...], c_s[...]),
                                 unroll=unroll)
    h_s[...] = h_fin
    c_s[...] = c_fin
    hn_ref[...] = h_fin
    cn_ref[...] = c_fin


# ----------------------------------------------------------------------------
# All directions of one LSTM layer in a single pallas_call.
# ----------------------------------------------------------------------------
def lstm_layer_call(x, w_ih_t, w_hh_t, b, *, compute_dtype=jnp.float32,
                    vmem_budget_bytes=24 * 1024 * 1024):
    """x: (S, B, In); w_ih_t: (D, In, 4H); w_hh_t: (D, H, 4H); b: (D, 4H).

    Returns (outs (D, S, B, H) in compute_dtype, h_n (D, B, H) f32,
             c_n (D, B, H) f32).
    """
    S, B, In = x.shape
    D, H, _ = w_hh_t.shape
    itemsize = jnp.dtype(compute_dtype).itemsize
    sub = 16 if itemsize == 2 else 8            # sublane packing for dtype
    lane_mult = 256 if H > 128 else 128         # whole MXU column tiles on v6e/v7x
    Hp = _round_up(H, lane_mult)
    Inp = _round_up(In, 128)
    Bp = _round_up(B, sub)

    # ---- time-chunk size from a VMEM budget (x/out chunks double-buffered,
    #      f32 gate scratch single-buffered, weights double-buffered) --------
    per_t = Bp * (2 * Inp * itemsize + 2 * Hp * itemsize + 4 * Hp * 4)
    fixed = 2 * (Inp + Hp) * 4 * Hp * itemsize + 6 * Bp * Hp * 4 + (1 << 20)
    T = max((vmem_budget_bytes - fixed) // per_t, 1)
    T = int(min(T, S))
    if T >= 8:
        T = (T // 8) * 8
    nchunks = (S + T - 1) // T
    Sp = nchunks * T

    # ---- padding / per-gate packing (each gate owns a whole Hp lane slab) --
    xp = jnp.pad(x.astype(compute_dtype),
                 ((0, Sp - S), (0, Bp - B), (0, Inp - In)))
    xp = xp.reshape(nchunks, T * Bp, Inp)

    wih = jnp.pad(w_ih_t.reshape(D, In, 4, H),
                  ((0, 0), (0, Inp - In), (0, 0), (0, Hp - H)))
    wih = wih.reshape(D, Inp, 4 * Hp).astype(compute_dtype)
    whh = jnp.pad(w_hh_t.reshape(D, H, 4, H),
                  ((0, 0), (0, Hp - H), (0, 0), (0, Hp - H)))
    whh = whh.reshape(D, Hp, 4 * Hp).astype(compute_dtype)
    bp = jnp.pad(b.reshape(D, 1, 4, H),
                 ((0, 0), (0, 0), (0, 0), (0, Hp - H)))
    bp = bp.reshape(D, 1, 4 * Hp).astype(jnp.float32)
    # Zero-padded weight rows/cols + zero initial state keep padded hidden
    # lanes exactly zero through the recurrence, so [:H] slicing is exact.

    kernel = functools.partial(
        _lstm_chunk_kernel, chunk_t=T, batch_p=Bp, hidden_p=Hp,
        seq_len=S, nchunks=nchunks, unroll=min(T, 8))

    def chunk_idx(dd, cc):                       # fwd: cc ; bwd: nchunks-1-cc
        return cc + dd * (nchunks - 1 - 2 * cc)

    outs, hn, cn = pl.pallas_call(
        kernel,
        grid=(D, nchunks),
        in_specs=[
            pl.BlockSpec((None, T * Bp, Inp),
                         lambda dd, cc: (chunk_idx(dd, cc), 0, 0)),
            pl.BlockSpec((None, Inp, 4 * Hp), lambda dd, cc: (dd, 0, 0)),
            pl.BlockSpec((None, Hp, 4 * Hp), lambda dd, cc: (dd, 0, 0)),
            pl.BlockSpec((None, 1, 4 * Hp), lambda dd, cc: (dd, 0, 0)),
        ],
        out_specs=(
            pl.BlockSpec((None, None, T * Bp, Hp),
                         lambda dd, cc: (dd, chunk_idx(dd, cc), 0, 0)),
            pl.BlockSpec((None, Bp, Hp), lambda dd, cc: (dd, 0, 0)),
            pl.BlockSpec((None, Bp, Hp), lambda dd, cc: (dd, 0, 0)),
        ),
        out_shape=(
            jax.ShapeDtypeStruct((D, nchunks, T * Bp, Hp), compute_dtype),
            jax.ShapeDtypeStruct((D, Bp, Hp), jnp.float32),
            jax.ShapeDtypeStruct((D, Bp, Hp), jnp.float32),
        ),
        scratch_shapes=[
            pltpu.VMEM((T * Bp, 4 * Hp), jnp.float32),   # chunk gate buffer
            pltpu.VMEM((Bp, Hp), jnp.float32),           # h carry
            pltpu.VMEM((Bp, Hp), jnp.float32),           # c carry
        ],
        compiler_params=pltpu.CompilerParams(
            dimension_semantics=("parallel", "arbitrary"),
            vmem_limit_bytes=48 * 1024 * 1024),
    )(xp, wih, whh, bp)

    outs = outs.reshape(D, Sp, Bp, Hp)[:, :S, :B, :H]
    return outs, hn[:, :B, :H], cn[:, :B, :H]


# ----------------------------------------------------------------------------
# Parameter construction (deterministic, PyTorch-style uniform(-k, k)).
# ----------------------------------------------------------------------------
def init_params(key, vocab, embed_dim, hidden_dim, n_layers, use_birnn):
    params = {}
    key, ek = jax.random.split(key)
    params["embedding"] = jax.random.normal(ek, (vocab, embed_dim),
                                            jnp.float32) * 0.1
    k = 1.0 / jnp.sqrt(hidden_dim)
    num_dirs = 2 if use_birnn else 1
    layers = []
    for layer in range(n_layers):
        in_dim = embed_dim if layer == 0 else hidden_dim * num_dirs
        w_ih_l, w_hh_l, b_l = [], [], []
        for _ in range(num_dirs):
            key, k1, k2, k3, k4 = jax.random.split(key, 5)
            w_ih = jax.random.uniform(k1, (4 * hidden_dim, in_dim),
                                      jnp.float32, -k, k)
            w_hh = jax.random.uniform(k2, (4 * hidden_dim, hidden_dim),
                                      jnp.float32, -k, k)
            b_ih = jax.random.uniform(k3, (4 * hidden_dim,), jnp.float32, -k, k)
            b_hh = jax.random.uniform(k4, (4 * hidden_dim,), jnp.float32, -k, k)
            w_ih_l.append(w_ih.T)          # (in_dim, 4H)
            w_hh_l.append(w_hh.T)          # (H, 4H)
            b_l.append(b_ih + b_hh)        # (4H,)
        layers.append({"w_ih_t": jnp.stack(w_ih_l),
                       "w_hh_t": jnp.stack(w_hh_l),
                       "b": jnp.stack(b_l)})
    params["lstm"] = layers
    return params


# ----------------------------------------------------------------------------
# Encoder forward (matches the PyTorch module's forward semantics).
# ----------------------------------------------------------------------------
@functools.partial(jax.jit, static_argnames=("use_birnn", "compute_dtype"))
def encoder_forward(params, x_tokens, use_birnn, compute_dtype=jnp.float32):
    """x_tokens: (S, B) int32  ->  (encoder_outs, (h_n, c_n))."""
    del use_birnn  # direction count is carried by the stacked params
    emb = jnp.take(params["embedding"], x_tokens, axis=0)   # (S, B, E)
    # TODO(synk): training-mode dropout (RNG mask) intentionally omitted
    # (eval-mode identity).
    h = emb
    h_states, c_states = [], []
    for layer in params["lstm"]:
        outs, hn, cn = lstm_layer_call(h, layer["w_ih_t"], layer["w_hh_t"],
                                       layer["b"], compute_dtype=compute_dtype)
        D = outs.shape[0]
        h = jnp.concatenate([outs[i] for i in range(D)], axis=-1)
        h_states.append(hn)
        c_states.append(cn)
    encoder_outs = h.astype(jnp.float32)         # dropout(identity)
    h_n = jnp.concatenate(h_states, axis=0)      # (n_layers*num_dirs, B, H)
    c_n = jnp.concatenate(c_states, axis=0)
    return encoder_outs, (h_n, c_n)


# ----------------------------------------------------------------------------
# Pure-JAX reference (lax.scan) for a numerical sanity check.
# ----------------------------------------------------------------------------
def _ref_lstm_layer(x, w_ih_t, w_hh_t, b, reverse):
    S, B, _ = x.shape
    H = w_hh_t.shape[0]
    xs = x[::-1] if reverse else x

    def step(carry, xt):
        h, c = carry
        g = xt @ w_ih_t + h @ w_hh_t + b
        i = jax.nn.sigmoid(g[:, 0 * H:1 * H])
        f = jax.nn.sigmoid(g[:, 1 * H:2 * H])
        gg = jnp.tanh(g[:, 2 * H:3 * H])
        o = jax.nn.sigmoid(g[:, 3 * H:4 * H])
        c = f * c + i * gg
        h = o * jnp.tanh(c)
        return (h, c), h

    init = (jnp.zeros((B, H), jnp.float32), jnp.zeros((B, H), jnp.float32))
    (hn, cn), ys = lax.scan(step, init, xs)
    if reverse:
        ys = ys[::-1]
    return ys, hn, cn


def _ref_encoder(params, x_tokens):
    emb = jnp.take(params["embedding"], x_tokens, axis=0)
    h = emb
    hs, cs = [], []
    for layer in params["lstm"]:
        D = layer["w_hh_t"].shape[0]
        outs = []
        for d in range(D):
            o, hn, cn = _ref_lstm_layer(h, layer["w_ih_t"][d],
                                        layer["w_hh_t"][d], layer["b"][d],
                                        reverse=(d == 1))
            outs.append(o)
            hs.append(hn)
            cs.append(cn)
        h = jnp.concatenate(outs, axis=-1)
    return h, (jnp.stack(hs, 0), jnp.stack(cs, 0))


if __name__ == "__main__":
    # Small, module-consistent shapes.
    vocab, embed_dim, hidden_dim = 32, 16, 32
    n_layers, use_birnn = 2, True
    seq_len, batch = 8, 2

    key = jax.random.PRNGKey(0)
    pkey, xkey = jax.random.split(key)
    params = init_params(pkey, vocab, embed_dim, hidden_dim, n_layers,
                         use_birnn)
    x = jax.random.randint(xkey, (seq_len, batch), 0, vocab, dtype=jnp.int32)

    # ---- f32 path: exact check against the pure-JAX reference -------------
    outs, (h_n, c_n) = encoder_forward(params, x, use_birnn)
    outs = jax.block_until_ready(outs)
    h_n = jax.block_until_ready(h_n)
    c_n = jax.block_until_ready(c_n)

    num_dirs = 2 if use_birnn else 1
    assert outs.shape == (seq_len, batch, num_dirs * hidden_dim)
    assert h_n.shape == (n_layers * num_dirs, batch, hidden_dim)
    assert c_n.shape == (n_layers * num_dirs, batch, hidden_dim)
    assert bool(jnp.all(jnp.isfinite(outs)))

    r_outs, (r_h, r_c) = _ref_encoder(params, x)
    assert bool(jnp.allclose(outs, r_outs, rtol=1e-5, atol=1e-5))
    assert bool(jnp.allclose(h_n, r_h, rtol=1e-5, atol=1e-5))
    assert bool(jnp.allclose(c_n, r_c, rtol=1e-5, atol=1e-5))

    # ---- bf16 storage path (native MXU path on v6e/v7x): loose check ------
    outs16, (h16, c16) = encoder_forward(params, x, use_birnn,
                                         compute_dtype=jnp.bfloat16)
    outs16 = jax.block_until_ready(outs16)
    assert outs16.shape == outs.shape
    assert bool(jnp.all(jnp.isfinite(outs16)))
    assert bool(jnp.allclose(outs16, r_outs, rtol=0.1, atol=0.15))
    assert bool(jnp.allclose(h16, r_h, rtol=0.1, atol=0.15))
    assert bool(jnp.allclose(c16, r_c, rtol=0.1, atol=0.15))

    print("KERNEL_OK")
</pallas_src>

<mosaic_0001>
module attributes {stable_mosaic.version = 11 : i64} {
  func.func @_lstm_chunk_kernel(%arg0: i32, %arg1: i32, %arg2: memref<1x64x128xf32, #tpu.memory_space<vmem>>, %arg3: memref<1x128x512xf32, #tpu.memory_space<vmem>>, %arg4: memref<1x128x512xf32, #tpu.memory_space<vmem>>, %arg5: memref<1x1x512xf32, #tpu.memory_space<vmem>>, %arg6: memref<1x1x64x128xf32, #tpu.memory_space<vmem>>, %arg7: memref<1x8x128xf32, #tpu.memory_space<vmem>>, %arg8: memref<1x8x128xf32, #tpu.memory_space<vmem>>, %arg9: memref<64x512xf32, #tpu.memory_space<vmem>>, %arg10: memref<8x128xf32, #tpu.memory_space<vmem>>, %arg11: memref<8x128xf32, #tpu.memory_space<vmem>>) attributes {dimension_semantics = [#tpu.dimension_semantics<parallel>, #tpu.dimension_semantics<arbitrary>], iteration_bounds = array<i64: 2, 1>, scalar_prefetch = 0 : i64, scratch_operands = 3 : i64, tpu.core_type = #tpu.core_type<tc>, window_params = [{transform_indices = @transform_0, window_bounds = array<i64: 1, 64, 128>}, {transform_indices = @transform_1, window_bounds = array<i64: 1, 128, 512>}, {transform_indices = @transform_2, window_bounds = array<i64: 1, 128, 512>}, {transform_indices = @transform_3, window_bounds = array<i64: 1, 1, 512>}, {transform_indices = @transform_4, window_bounds = array<i64: 1, 1, 64, 128>}, {transform_indices = @transform_5, window_bounds = array<i64: 1, 8, 128>}, {transform_indices = @transform_6, window_bounds = array<i64: 1, 8, 128>}]} {
    %c2_i32 = arith.constant 2 : i32
    %0 = arith.muli %c2_i32, %arg1 : i32
    %c0_i32 = arith.constant 0 : i32
    %1 = arith.subi %c0_i32, %0 : i32
    %2 = arith.muli %arg0, %1 : i32
    %3 = arith.addi %arg1, %2 : i32
    %c0_i32_0 = arith.constant 0 : i32
    %4 = arith.cmpi eq, %arg1, %c0_i32_0 : i32
    %5 = arith.extui %4 : i1 to i32
    %c0_i32_1 = arith.constant 0 : i32
    %6 = arith.cmpi ne, %5, %c0_i32_1 : i32
    scf.if %6 {
      %cst_135 = arith.constant 0.000000e+00 : f32
      %381 = vector.broadcast %cst_135 : f32 to vector<8x128xf32>
      %c0_136 = arith.constant 0 : index
      %c0_137 = arith.constant 0 : index
      %382 = vector.load %arg10[%c0_136, %c0_137] : memref<8x128xf32, #tpu.memory_space<vmem>>, vector<8x128xf32>
      tpu.vector_store %arg10[%c0_136, %c0_137], %381 {strides = array<i32>} : memref<8x128xf32, #tpu.memory_space<vmem>>, vector<8x128xf32>,
      %cst_138 = arith.constant 0.000000e+00 : f32
      %383 = vector.broadcast %cst_138 : f32 to vector<8x128xf32>
      %c0_139 = arith.constant 0 : index
      %c0_140 = arith.constant 0 : index
      %384 = vector.load %arg11[%c0_139, %c0_140] : memref<8x128xf32, #tpu.memory_space<vmem>>, vector<8x128xf32>
      tpu.vector_store %arg11[%c0_139, %c0_140], %383 {strides = array<i32>} : memref<8x128xf32, #tpu.memory_space<vmem>>, vector<8x128xf32>,
    } else {
    }
    %c0 = arith.constant 0 : index
    %c0_2 = arith.constant 0 : index
    %c0_3 = arith.constant 0 : index
    %7 = vector.load %arg2[%c0, %c0_2, %c0_3] : memref<1x64x128xf32, #tpu.memory_space<vmem>>, vector<1x64x128xf32>
    %8 = vector.shape_cast %7 : vector<1x64x128xf32> to vector<64x128xf32>
    %c0_4 = arith.constant 0 : index
    %c0_5 = arith.constant 0 : index
    %c0_6 = arith.constant 0 : index
    %9 = vector.load %arg3[%c0_4, %c0_5, %c0_6] : memref<1x128x512xf32, #tpu.memory_space<vmem>>, vector<1x128x512xf32>
    %10 = vector.shape_cast %9 : vector<1x128x512xf32> to vector<128x512xf32>
    %cst = arith.constant dense<0.000000e+00> : vector<64x512xf32>
    %11 = tpu.matmul %8, %10, %cst {dimension_numbers = #tpu.dot_dimension_numbers<[1], [0], [0], [1], [0, 0, 1, 1], [], []>} : vector<64x128xf32>, vector<128x512xf32>, vector<64x512xf32> -> vector<64x512xf32>
    %c0_7 = arith.constant 0 : index
    %c0_8 = arith.constant 0 : index
    %c0_9 = arith.constant 0 : index
    %12 = vector.load %arg5[%c0_7, %c0_8, %c0_9] : memref<1x1x512xf32, #tpu.memory_space<vmem>>, vector<1x1x512xf32>
    %13 = vector.shape_cast %12 : vector<1x1x512xf32> to vector<1x512xf32>
    %14 = vector.broadcast %13 : vector<1x512xf32> to vector<64x512xf32>
    %15 = arith.addf %11, %14 : vector<64x512xf32>
    %c0_10 = arith.constant 0 : index
    %c0_11 = arith.constant 0 : index
    %16 = vector.load %arg9[%c0_10, %c0_11] : memref<64x512xf32, #tpu.memory_space<vmem>>, vector<64x512xf32>
    tpu.vector_store %arg9[%c0_10, %c0_11], %15 {strides = array<i32>} : memref<64x512xf32, #tpu.memory_space<vmem>>, vector<64x512xf32>,
    %c0_12 = arith.constant 0 : index
    %c0_13 = arith.constant 0 : index
    %c0_14 = arith.constant 0 : index
    %17 = vector.load %arg4[%c0_12, %c0_13, %c0_14] : memref<1x128x512xf32, #tpu.memory_space<vmem>>, vector<1x128x512xf32>
    %18 = vector.shape_cast %17 : vector<1x128x512xf32> to vector<128x512xf32>
    %c0_15 = arith.constant 0 : index
    %c0_16 = arith.constant 0 : index
    %19 = vector.load %arg10[%c0_15, %c0_16] : memref<8x128xf32, #tpu.memory_space<vmem>>, vector<8x128xf32>
    %c0_17 = arith.constant 0 : index
    %c0_18 = arith.constant 0 : index
    %20 = vector.load %arg11[%c0_17, %c0_18] : memref<8x128xf32, #tpu.memory_space<vmem>>, vector<8x128xf32>
    %c0_i32_19 = arith.constant 0 : i32
    %c2_i32_20 = arith.constant 2 : i32
    %21 = arith.muli %c2_i32_20, %c0_i32_19 : i32
    %c7_i32 = arith.constant 7 : i32
    %22 = arith.subi %c7_i32, %21 : i32
    %23 = arith.muli %arg0, %22 : i32
    %24 = arith.addi %c0_i32_19, %23 : i32
    %c8_i32 = arith.constant 8 : i32
    %25 = arith.muli %24, %c8_i32 : i32
    %26 = tpu.assume_multiple %25, 8 : i32
    %27 = arith.index_cast %26 : i32 to index
    %c0_21 = arith.constant 0 : index
    %28 = vector.load %arg9[%27, %c0_21] : memref<64x512xf32, #tpu.memory_space<vmem>>, vector<8x512xf32>
    %cst_22 = arith.constant dense<0.000000e+00> : vector<8x512xf32>
    %29 = tpu.matmul %19, %18, %cst_22 {dimension_numbers = #tpu.dot_dimension_numbers<[1], [0], [0], [1], [0, 0, 1, 1], [], []>} : vector<8x128xf32>, vector<128x512xf32>, vector<8x512xf32> -> vector<8x512xf32>
    %30 = arith.addf %28, %29 : vector<8x512xf32>
    %31 = vector.extract_strided_slice %30 {offsets = [0, 0], sizes = [8, 128], strides = [1, 1]} : vector<8x512xf32> to vector<8x128xf32>
    %32 = arith.negf %31 : vector<8x128xf32>
    %33 = math.exp %32 : vector<8x128xf32>
    %cst_23 = arith.constant 1.000000e+00 : f32
    %34 = vector.broadcast %cst_23 : f32 to vector<8x128xf32>
    %35 = arith.addf %34, %33 : vector<8x128xf32>
    %36 = arith.divf %34, %35 : vector<8x128xf32>
    %37 = vector.extract_strided_slice %30 {offsets = [0, 128], sizes = [8, 128], strides = [1, 1]} : vector<8x512xf32> to vector<8x128xf32>
    %38 = arith.negf %37 : vector<8x128xf32>
    %39 = math.exp %38 : vector<8x128xf32>
    %cst_24 = arith.constant 1.000000e+00 : f32
    %40 = vector.broadcast %cst_24 : f32 to vector<8x128xf32>
    %41 = arith.addf %40, %39 : vector<8x128xf32>
    %42 = arith.divf %40, %41 : vector<8x128xf32>
    %43 = vector.extract_strided_slice %30 {offsets = [0, 256], sizes = [8, 128], strides = [1, 1]} : vector<8x512xf32> to vector<8x128xf32>
    %44 = math.tanh %43 : vector<8x128xf32>
    %45 = vector.extract_strided_slice %30 {offsets = [0, 384], sizes = [8, 128], strides = [1, 1]} : vector<8x512xf32> to vector<8x128xf32>
    %46 = arith.negf %45 : vector<8x128xf32>
    %47 = math.exp %46 : vector<8x128xf32>
    %cst_25 = arith.constant 1.000000e+00 : f32
    %48 = vector.broadcast %cst_25 : f32 to vector<8x128xf32>
    %49 = arith.addf %48, %47 : vector<8x128xf32>
    %50 = arith.divf %48, %49 : vector<8x128xf32>
    %51 = arith.mulf %42, %20 : vector<8x128xf32>
    %52 = arith.mulf %36, %44 : vector<8x128xf32>
    %53 = arith.addf %51, %52 : vector<8x128xf32>
    %54 = math.tanh %53 : vector<8x128xf32>
    %55 = arith.mulf %50, %54 : vector<8x128xf32>
    %c8_i32_26 = arith.constant 8 : i32
    %56 = arith.muli %3, %c8_i32_26 : i32
    %57 = arith.addi %56, %24 : i32
    %c8_i32_27 = arith.constant 8 : i32
    %58 = arith.cmpi slt, %57, %c8_i32_27 : i32
    %59 = arith.select %58, %53, %20 : vector<8x128xf32>
    %60 = arith.select %58, %55, %19 : vector<8x128xf32>
    %c0_28 = arith.constant 0 : index
    %c0_29 = arith.constant 0 : index
    %61 = arith.index_cast %26 : i32 to index
    %c0_30 = arith.constant 0 : index
    %62 = vector.load %arg6[%c0_28, %c0_29, %61, %c0_30] : memref<1x1x64x128xf32, #tpu.memory_space<vmem>>, vector<1x1x8x128xf32>
    %63 = vector.shape_cast %62 : vector<1x1x8x128xf32> to vector<8x128xf32>
    %64 = vector.shape_cast %60 : vector<8x128xf32> to vector<1x1x8x128xf32>
    tpu.vector_store %arg6[%c0_28, %c0_29, %61, %c0_30], %64 {strides = array<i32>} : memref<1x1x64x128xf32, #tpu.memory_space<vmem>>, vector<1x1x8x128xf32>,
    %c1_i32 = arith.constant 1 : i32
    %c2_i32_31 = arith.constant 2 : i32
    %65 = arith.muli %c2_i32_31, %c1_i32 : i32
    %c7_i32_32 = arith.constant 7 : i32
    %66 = arith.subi %c7_i32_32, %65 : i32
    %67 = arith.muli %arg0, %66 : i32
    %68 = arith.addi %c1_i32, %67 : i32
    %c8_i32_33 = arith.constant 8 : i32
    %69 = arith.muli %68, %c8_i32_33 : i32
    %70 = tpu.assume_multiple %69, 8 : i32
    %71 = arith.index_cast %70 : i32 to index
    %c0_34 = arith.constant 0 : index
    %72 = vector.load %arg9[%71, %c0_34] : memref<64x512xf32, #tpu.memory_space<vmem>>, vector<8x512xf32>
    %cst_35 = arith.constant dense<0.000000e+00> : vector<8x512xf32>
    %73 = tpu.matmul %60, %18, %cst_35 {dimension_numbers = #tpu.dot_dimension_numbers<[1], [0], [0], [1], [0, 0, 1, 1], [], []>} : vector<8x128xf32>, vector<128x512xf32>, vector<8x512xf32> -> vector<8x512xf32>
    %74 = arith.addf %72, %73 : vector<8x512xf32>
    %75 = vector.extract_strided_slice %74 {offsets = [0, 0], sizes = [8, 128], strides = [1, 1]} : vector<8x512xf32> to vector<8x128xf32>
    %76 = arith.negf %75 : vector<8x128xf32>
    %77 = math.exp %76 : vector<8x128xf32>
    %cst_36 = arith.constant 1.000000e+00 : f32
    %78 = vector.broadcast %cst_36 : f32 to vector<8x128xf32>
    %79 = arith.addf %78, %77 : vector<8x128xf32>
    %80 = arith.divf %78, %79 : vector<8x128xf32>
    %81 = vector.extract_strided_slice %74 {offsets = [0, 128], sizes = [8, 128], strides = [1, 1]} : vector<8x512xf32> to vector<8x128xf32>
    %82 = arith.negf %81 : vector<8x128xf32>
    %83 = math.exp %82 : vector<8x128xf32>
    %cst_37 = arith.constant 1.000000e+00 : f32
    %84 = vector.broadcast %cst_37 : f32 to vector<8x128xf32>
    %85 = arith.addf %84, %83 : vector<8x128xf32>
    %86 = arith.divf %84, %85 : vector<8x128xf32>
    %87 = vector.extract_strided_slice %74 {offsets = [0, 256], sizes = [8, 128], strides = [1, 1]} : vector<8x512xf32> to vector<8x128xf32>
    %88 = math.tanh %87 : vector<8x128xf32>
    %89 = vector.extract_strided_slice %74 {offsets = [0, 384], sizes = [8, 128], strides = [1, 1]} : vector<8x512xf32> to vector<8x128xf32>
    %90 = arith.negf %89 : vector<8x128xf32>
    %91 = math.exp %90 : vector<8x128xf32>
    %cst_38 = arith.constant 1.000000e+00 : f32
    %92 = vector.broadcast %cst_38 : f32 to vector<8x128xf32>
    %93 = arith.addf %92, %91 : vector<8x128xf32>
    %94 = arith.divf %92, %93 : vector<8x128xf32>
    %95 = arith.mulf %86, %59 : vector<8x128xf32>
    %96 = arith.mulf %80, %88 : vector<8x128xf32>
    %97 = arith.addf %95, %96 : vector<8x128xf32>
    %98 = math.tanh %97 : vector<8x128xf32>
    %99 = arith.mulf %94, %98 : vector<8x128xf32>
    %c8_i32_39 = arith.constant 8 : i32
    %100 = arith.muli %3, %c8_i32_39 : i32
    %101 = arith.addi %100, %68 : i32
    %c8_i32_40 = arith.constant 8 : i32
    %102 = arith.cmpi slt, %101, %c8_i32_40 : i32
    %103 = arith.select %102, %97, %59 : vector<8x128xf32>
    %104 = arith.select %102, %99, %60 : vector<8x128xf32>
    %c0_41 = arith.constant 0 : index
    %c0_42 = arith.constant 0 : index
    %105 = arith.index_cast %70 : i32 to index
    %c0_43 = arith.constant 0 : index
    %106 = vector.load %arg6[%c0_41, %c0_42, %105, %c0_43] : memref<1x1x64x128xf32, #tpu.memory_space<vmem>>, vector<1x1x8x128xf32>
    %107 = vector.shape_cast %106 : vector<1x1x8x128xf32> to vector<8x128xf32>
    %108 = vector.shape_cast %104 : vector<8x128xf32> to vector<1x1x8x128xf32>
    tpu.vector_store %arg6[%c0_41, %c0_42, %105, %c0_43], %108 {strides = array<i32>} : memref<1x1x64x128xf32, #tpu.memory_space<vmem>>, vector<1x1x8x128xf32>,
    %c2_i32_44 = arith.constant 2 : i32
    %c2_i32_45 = arith.constant 2 : i32
    %109 = arith.muli %c2_i32_45, %c2_i32_44 : i32
    %c7_i32_46 = arith.constant 7 : i32
    %110 = arith.subi %c7_i32_46, %109 : i32
    %111 = arith.muli %arg0, %110 : i32
    %112 = arith.addi %c2_i32_44, %111 : i32
    %c8_i32_47 = arith.constant 8 : i32
    %113 = arith.muli %112, %c8_i32_47 : i32
    %114 = tpu.assume_multiple %113, 8 : i32
    %115 = arith.index_cast %114 : i32 to index
    %c0_48 = arith.constant 0 : index
    %116 = vector.load %arg9[%115, %c0_48] : memref<64x512xf32, #tpu.memory_space<vmem>>, vector<8x512xf32>
    %cst_49 = arith.constant dense<0.000000e+00> : vector<8x512xf32>
    %117 = tpu.matmul %104, %18, %cst_49 {dimension_numbers = #tpu.dot_dimension_numbers<[1], [0], [0], [1], [0, 0, 1, 1], [], []>} : vector<8x128xf32>, vector<128x512xf32>, vector<8x512xf32> -> vector<8x512xf32>
    %118 = arith.addf %116, %117 : vector<8x512xf32>
    %119 = vector.extract_strided_slice %118 {offsets = [0, 0], sizes = [8, 128], strides = [1, 1]} : vector<8x512xf32> to vector<8x128xf32>
    %120 = arith.negf %119 : vector<8x128xf32>
    %121 = math.exp %120 : vector<8x128xf32>
    %cst_50 = arith.constant 1.000000e+00 : f32
    %122 = vector.broadcast %cst_50 : f32 to vector<8x128xf32>
    %123 = arith.addf %122, %121 : vector<8x128xf32>
    %124 = arith.divf %122, %123 : vector<8x128xf32>
    %125 = vector.extract_strided_slice %118 {offsets = [0, 128], sizes = [8, 128], strides = [1, 1]} : vector<8x512xf32> to vector<8x128xf32>
    %126 = arith.negf %125 : vector<8x128xf32>
    %127 = math.exp %126 : vector<8x128xf32>
    %cst_51 = arith.constant 1.000000e+00 : f32
    %128 = vector.broadcast %cst_51 : f32 to vector<8x128xf32>
    %129 = arith.addf %128, %127 : vector<8x128xf32>
    %130 = arith.divf %128, %129 : vector<8x128xf32>
    %131 = vector.extract_strided_slice %118 {offsets = [0, 256], sizes = [8, 128], strides = [1, 1]} : vector<8x512xf32> to vector<8x128xf32>
    %132 = math.tanh %131 : vector<8x128xf32>
    %133 = vector.extract_strided_slice %118 {offsets = [0, 384], sizes = [8, 128], strides = [1, 1]} : vector<8x512xf32> to vector<8x128xf32>
    %134 = arith.negf %133 : vector<8x128xf32>
    %135 = math.exp %134 : vector<8x128xf32>
    %cst_52 = arith.constant 1.000000e+00 : f32
    %136 = vector.broadcast %cst_52 : f32 to vector<8x128xf32>
    %137 = arith.addf %136, %135 : vector<8x128xf32>
    %138 = arith.divf %136, %137 : vector<8x128xf32>
    %139 = arith.mulf %130, %103 : vector<8x128xf32>
    %140 = arith.mulf %124, %132 : vector<8x128xf32>
    %141 = arith.addf %139, %140 : vector<8x128xf32>
    %142 = math.tanh %141 : vector<8x128xf32>
    %143 = arith.mulf %138, %142 : vector<8x128xf32>
    %c8_i32_53 = arith.constant 8 : i32
    %144 = arith.muli %3, %c8_i32_53 : i32
    %145 = arith.addi %144, %112 : i32
    %c8_i32_54 = arith.constant 8 : i32
    %146 = arith.cmpi slt, %145, %c8_i32_54 : i32
    %147 = arith.select %146, %141, %103 : vector<8x128xf32>
    %148 = arith.select %146, %143, %104 : vector<8x128xf32>
    %c0_55 = arith.constant 0 : index
    %c0_56 = arith.constant 0 : index
    %149 = arith.index_cast %114 : i32 to index
    %c0_57 = arith.constant 0 : index
    %150 = vector.load %arg6[%c0_55, %c0_56, %149, %c0_57] : memref<1x1x64x128xf32, #tpu.memory_space<vmem>>, vector<1x1x8x128xf32>
    %151 = vector.shape_cast %150 : vector<1x1x8x128xf32> to vector<8x128xf32>
    %152 = vector.shape_cast %148 : vector<8x128xf32> to vector<1x1x8x128xf32>
    tpu.vector_store %arg6[%c0_55, %c0_56, %149, %c0_57], %152 {strides = array<i32>} : memref<1x1x64x128xf32, #tpu.memory_space<vmem>>, vector<1x1x8x128xf32>,
    %c3_i32 = arith.constant 3 : i32
    %c2_i32_58 = arith.constant 2 : i32
    %153 = arith.muli %c2_i32_58, %c3_i32 : i32
    %c7_i32_59 = arith.constant 7 : i32
    %154 = arith.subi %c7_i32_59, %153 : i32
    %155 = arith.muli %arg0, %154 : i32
    %156 = arith.addi %c3_i32, %155 : i32
    %c8_i32_60 = arith.constant 8 : i32
    %157 = arith.muli %156, %c8_i32_60 : i32
    %158 = tpu.assume_multiple %157, 8 : i32
    %159 = arith.index_cast %158 : i32 to index
    %c0_61 = arith.constant 0 : index
    %160 = vector.load %arg9[%159, %c0_61] : memref<64x512xf32, #tpu.memory_space<vmem>>, vector<8x512xf32>
    %cst_62 = arith.constant dense<0.000000e+00> : vector<8x512xf32>
    %161 = tpu.matmul %148, %18, %cst_62 {dimension_numbers = #tpu.dot_dimension_numbers<[1], [0], [0], [1], [0, 0, 1, 1], [], []>} : vector<8x128xf32>, vector<128x512xf32>, vector<8x512xf32> -> vector<8x512xf32>
    %162 = arith.addf %160, %161 : vector<8x512xf32>
    %163 = vector.extract_strided_slice %162 {offsets = [0, 0], sizes = [8, 128], strides = [1, 1]} : vector<8x512xf32> to vector<8x128xf32>
    %164 = arith.negf %163 : vector<8x128xf32>
    %165 = math.exp %164 : vector<8x128xf32>
    %cst_63 = arith.constant 1.000000e+00 : f32
    %166 = vector.broadcast %cst_63 : f32 to vector<8x128xf32>
    %167 = arith.addf %166, %165 : vector<8x128xf32>
    %168 = arith.divf %166, %167 : vector<8x128xf32>
    %169 = vector.extract_strided_slice %162 {offsets = [0, 128], sizes = [8, 128], strides = [1, 1]} : vector<8x512xf32> to vector<8x128xf32>
    %170 = arith.negf %169 : vector<8x128xf32>
    %171 = math.exp %170 : vector<8x128xf32>
    %cst_64 = arith.constant 1.000000e+00 : f32
    %172 = vector.broadcast %cst_64 : f32 to vector<8x128xf32>
    %173 = arith.addf %172, %171 : vector<8x128xf32>
    %174 = arith.divf %172, %173 : vector<8x128xf32>
    %175 = vector.extract_strided_slice %162 {offsets = [0, 256], sizes = [8, 128], strides = [1, 1]} : vector<8x512xf32> to vector<8x128xf32>
    %176 = math.tanh %175 : vector<8x128xf32>
    %177 = vector.extract_strided_slice %162 {offsets = [0, 384], sizes = [8, 128], strides = [1, 1]} : vector<8x512xf32> to vector<8x128xf32>
    %178 = arith.negf %177 : vector<8x128xf32>
    %179 = math.exp %178 : vector<8x128xf32>
    %cst_65 = arith.constant 1.000000e+00 : f32
    %180 = vector.broadcast %cst_65 : f32 to vector<8x128xf32>
    %181 = arith.addf %180, %179 : vector<8x128xf32>
    %182 = arith.divf %180, %181 : vector<8x128xf32>
    %183 = arith.mulf %174, %147 : vector<8x128xf32>
    %184 = arith.mulf %168, %176 : vector<8x128xf32>
    %185 = arith.addf %183, %184 : vector<8x128xf32>
    %186 = math.tanh %185 : vector<8x128xf32>
    %187 = arith.mulf %182, %186 : vector<8x128xf32>
    %c8_i32_66 = arith.constant 8 : i32
    %188 = arith.muli %3, %c8_i32_66 : i32
    %189 = arith.addi %188, %156 : i32
    %c8_i32_67 = arith.constant 8 : i32
    %190 = arith.cmpi slt, %189, %c8_i32_67 : i32
    %191 = arith.select %190, %185, %147 : vector<8x128xf32>
    %192 = arith.select %190, %187, %148 : vector<8x128xf32>
    %c0_68 = arith.constant 0 : index
    %c0_69 = arith.constant 0 : index
    %193 = arith.index_cast %158 : i32 to index
    %c0_70 = arith.constant 0 : index
    %194 = vector.load %arg6[%c0_68, %c0_69, %193, %c0_70] : memref<1x1x64x128xf32, #tpu.memory_space<vmem>>, vector<1x1x8x128xf32>
    %195 = vector.shape_cast %194 : vector<1x1x8x128xf32> to vector<8x128xf32>
    %196 = vector.shape_cast %192 : vector<8x128xf32> to vector<1x1x8x128xf32>
    tpu.vector_store %arg6[%c0_68, %c0_69, %193, %c0_70], %196 {strides = array<i32>} : memref<1x1x64x128xf32, #tpu.memory_space<vmem>>, vector<1x1x8x128xf32>,
    %c4_i32 = arith.constant 4 : i32
    %c2_i32_71 = arith.constant 2 : i32
    %197 = arith.muli %c2_i32_71, %c4_i32 : i32
    %c7_i32_72 = arith.constant 7 : i32
    %198 = arith.subi %c7_i32_72, %197 : i32
    %199 = arith.muli %arg0, %198 : i32
    %200 = arith.addi %c4_i32, %199 : i32
    %c8_i32_73 = arith.constant 8 : i32
    %201 = arith.muli %200, %c8_i32_73 : i32
    %202 = tpu.assume_multiple %201, 8 : i32
    %203 = arith.index_cast %202 : i32 to index
    %c0_74 = arith.constant 0 : index
    %204 = vector.load %arg9[%203, %c0_74] : memref<64x512xf32, #tpu.memory_space<vmem>>, vector<8x512xf32>
    %cst_75 = arith.constant dense<0.000000e+00> : vector<8x512xf32>
    %205 = tpu.matmul %192, %18, %cst_75 {dimension_numbers = #tpu.dot_dimension_numbers<[1], [0], [0], [1], [0, 0, 1, 1], [], []>} : vector<8x128xf32>, vector<128x512xf32>, vector<8x512xf32> -> vector<8x512xf32>
    %206 = arith.addf %204, %205 : vector<8x512xf32>
    %207 = vector.extract_strided_slice %206 {offsets = [0, 0], sizes = [8, 128], strides = [1, 1]} : vector<8x512xf32> to vector<8x128xf32>
    %208 = arith.negf %207 : vector<8x128xf32>
    %209 = math.exp %208 : vector<8x128xf32>
    %cst_76 = arith.constant 1.000000e+00 : f32
    %210 = vector.broadcast %cst_76 : f32 to vector<8x128xf32>
    %211 = arith.addf %210, %209 : vector<8x128xf32>
    %212 = arith.divf %210, %211 : vector<8x128xf32>
    %213 = vector.extract_strided_slice %206 {offsets = [0, 128], sizes = [8, 128], strides = [1, 1]} : vector<8x512xf32> to vector<8x128xf32>
    %214 = arith.negf %213 : vector<8x128xf32>
    %215 = math.exp %214 : vector<8x128xf32>
    %cst_77 = arith.constant 1.000000e+00 : f32
    %216 = vector.broadcast %cst_77 : f32 to vector<8x128xf32>
    %217 = arith.addf %216, %215 : vector<8x128xf32>
    %218 = arith.divf %216, %217 : vector<8x128xf32>
    %219 = vector.extract_strided_slice %206 {offsets = [0, 256], sizes = [8, 128], strides = [1, 1]} : vector<8x512xf32> to vector<8x128xf32>
    %220 = math.tanh %219 : vector<8x128xf32>
    %221 = vector.extract_strided_slice %206 {offsets = [0, 384], sizes = [8, 128], strides = [1, 1]} : vector<8x512xf32> to vector<8x128xf32>
    %222 = arith.negf %221 : vector<8x128xf32>
    %223 = math.exp %222 : vector<8x128xf32>
    %cst_78 = arith.constant 1.000000e+00 : f32
    %224 = vector.broadcast %cst_78 : f32 to vector<8x128xf32>
    %225 = arith.addf %224, %223 : vector<8x128xf32>
    %226 = arith.divf %224, %225 : vector<8x128xf32>
    %227 = arith.mulf %218, %191 : vector<8x128xf32>
    %228 = arith.mulf %212, %220 : vector<8x128xf32>
    %229 = arith.addf %227, %228 : vector<8x128xf32>
    %230 = math.tanh %229 : vector<8x128xf32>
    %231 = arith.mulf %226, %230 : vector<8x128xf32>
    %c8_i32_79 = arith.constant 8 : i32
    %232 = arith.muli %3, %c8_i32_79 : i32
    %233 = arith.addi %232, %200 : i32
    %c8_i32_80 = arith.constant 8 : i32
    %234 = arith.cmpi slt, %233, %c8_i32_80 : i32
    %235 = arith.select %234, %229, %191 : vector<8x128xf32>
    %236 = arith.select %234, %231, %192 : vector<8x128xf32>
    %c0_81 = arith.constant 0 : index
    %c0_82 = arith.constant 0 : index
    %237 = arith.index_cast %202 : i32 to index
    %c0_83 = arith.constant 0 : index
    %238 = vector.load %arg6[%c0_81, %c0_82, %237, %c0_83] : memref<1x1x64x128xf32, #tpu.memory_space<vmem>>, vector<1x1x8x128xf32>
    %239 = vector.shape_cast %238 : vector<1x1x8x128xf32> to vector<8x128xf32>
    %240 = vector.shape_cast %236 : vector<8x128xf32> to vector<1x1x8x128xf32>
    tpu.vector_store %arg6[%c0_81, %c0_82, %237, %c0_83], %240 {strides = array<i32>} : memref<1x1x64x128xf32, #tpu.memory_space<vmem>>, vector<1x1x8x128xf32>,
    %c5_i32 = arith.constant 5 : i32
    %c2_i32_84 = arith.constant 2 : i32
    %241 = arith.muli %c2_i32_84, %c5_i32 : i32
    %c7_i32_85 = arith.constant 7 : i32
    %242 = arith.subi %c7_i32_85, %241 : i32
    %243 = arith.muli %arg0, %242 : i32
    %244 = arith.addi %c5_i32, %243 : i32
    %c8_i32_86 = arith.constant 8 : i32
    %245 = arith.muli %244, %c8_i32_86 : i32
    %246 = tpu.assume_multiple %245, 8 : i32
    %247 = arith.index_cast %246 : i32 to index
    %c0_87 = arith.constant 0 : index
    %248 = vector.load %arg9[%247, %c0_87] : memref<64x512xf32, #tpu.memory_space<vmem>>, vector<8x512xf32>
    %cst_88 = arith.constant dense<0.000000e+00> : vector<8x512xf32>
    %249 = tpu.matmul %236, %18, %cst_88 {dimension_numbers = #tpu.dot_dimension_numbers<[1], [0], [0], [1], [0, 0, 1, 1], [], []>} : vector<8x128xf32>, vector<128x512xf32>, vector<8x512xf32> -> vector<8x512xf32>
    %250 = arith.addf %248, %249 : vector<8x512xf32>
    %251 = vector.extract_strided_slice %250 {offsets = [0, 0], sizes = [8, 128], strides = [1, 1]} : vector<8x512xf32> to vector<8x128xf32>
    %252 = arith.negf %251 : vector<8x128xf32>
    %253 = math.exp %252 : vector<8x128xf32>
    %cst_89 = arith.constant 1.000000e+00 : f32
    %254 = vector.broadcast %cst_89 : f32 to vector<8x128xf32>
    %255 = arith.addf %254, %253 : vector<8x128xf32>
    %256 = arith.divf %254, %255 : vector<8x128xf32>
    %257 = vector.extract_strided_slice %250 {offsets = [0, 128], sizes = [8, 128], strides = [1, 1]} : vector<8x512xf32> to vector<8x128xf32>
    %258 = arith.negf %257 : vector<8x128xf32>
    %259 = math.exp %258 : vector<8x128xf32>
    %cst_90 = arith.constant 1.000000e+00 : f32
    %260 = vector.broadcast %cst_90 : f32 to vector<8x128xf32>
    %261 = arith.addf %260, %259 : vector<8x128xf32>
    %262 = arith.divf %260, %261 : vector<8x128xf32>
    %263 = vector.extract_strided_slice %250 {offsets = [0, 256], sizes = [8, 128], strides = [1, 1]} : vector<8x512xf32> to vector<8x128xf32>
    %264 = math.tanh %263 : vector<8x128xf32>
    %265 = vector.extract_strided_slice %250 {offsets = [0, 384], sizes = [8, 128], strides = [1, 1]} : vector<8x512xf32> to vector<8x128xf32>
    %266 = arith.negf %265 : vector<8x128xf32>
    %267 = math.exp %266 : vector<8x128xf32>
    %cst_91 = arith.constant 1.000000e+00 : f32
    %268 = vector.broadcast %cst_91 : f32 to vector<8x128xf32>
    %269 = arith.addf %268, %267 : vector<8x128xf32>
    %270 = arith.divf %268, %269 : vector<8x128xf32>
    %271 = arith.mulf %262, %235 : vector<8x128xf32>
    %272 = arith.mulf %256, %264 : vector<8x128xf32>
    %273 = arith.addf %271, %272 : vector<8x128xf32>
    %274 = math.tanh %273 : vector<8x128xf32>
    %275 = arith.mulf %270, %274 : vector<8x128xf32>
    %c8_i32_92 = arith.constant 8 : i32
    %276 = arith.muli %3, %c8_i32_92 : i32
    %277 = arith.addi %276, %244 : i32
    %c8_i32_93 = arith.constant 8 : i32
    %278 = arith.cmpi slt, %277, %c8_i32_93 : i32
    %279 = arith.select %278, %273, %235 : vector<8x128xf32>
    %280 = arith.select %278, %275, %236 : vector<8x128xf32>
    %c0_94 = arith.constant 0 : index
    %c0_95 = arith.constant 0 : index
    %281 = arith.index_cast %246 : i32 to index
    %c0_96 = arith.constant 0 : index
    %282 = vector.load %arg6[%c0_94, %c0_95, %281, %c0_96] : memref<1x1x64x128xf32, #tpu.memory_space<vmem>>, vector<1x1x8x128xf32>
    %283 = vector.shape_cast %282 : vector<1x1x8x128xf32> to vector<8x128xf32>
    %284 = vector.shape_cast %280 : vector<8x128xf32> to vector<1x1x8x128xf32>
    tpu.vector_store %arg6[%c0_94, %c0_95, %281, %c0_96], %284 {strides = array<i32>} : memref<1x1x64x128xf32, #tpu.memory_space<vmem>>, vector<1x1x8x128xf32>,
    %c6_i32 = arith.constant 6 : i32
    %c2_i32_97 = arith.constant 2 : i32
    %285 = arith.muli %c2_i32_97, %c6_i32 : i32
    %c7_i32_98 = arith.constant 7 : i32
    %286 = arith.subi %c7_i32_98, %285 : i32
    %287 = arith.muli %arg0, %286 : i32
    %288 = arith.addi %c6_i32, %287 : i32
    %c8_i32_99 = arith.constant 8 : i32
    %289 = arith.muli %288, %c8_i32_99 : i32
    %290 = tpu.assume_multiple %289, 8 : i32
    %291 = arith.index_cast %290 : i32 to index
    %c0_100 = arith.constant 0 : index
    %292 = vector.load %arg9[%291, %c0_100] : memref<64x512xf32, #tpu.memory_space<vmem>>, vector<8x512xf32>
    %cst_101 = arith.constant dense<0.000000e+00> : vector<8x512xf32>
    %293 = tpu.matmul %280, %18, %cst_101 {dimension_numbers = #tpu.dot_dimension_numbers<[1], [0], [0], [1], [0, 0, 1, 1], [], []>} : vector<8x128xf32>, vector<128x512xf32>, vector<8x512xf32> -> vector<8x512xf32>
    %294 = arith.addf %292, %293 : vector<8x512xf32>
    %295 = vector.extract_strided_slice %294 {offsets = [0, 0], sizes = [8, 128], strides = [1, 1]} : vector<8x512xf32> to vector<8x128xf32>
    %296 = arith.negf %295 : vector<8x128xf32>
    %297 = math.exp %296 : vector<8x128xf32>
    %cst_102 = arith.constant 1.000000e+00 : f32
    %298 = vector.broadcast %cst_102 : f32 to vector<8x128xf32>
    %299 = arith.addf %298, %297 : vector<8x128xf32>
    %300 = arith.divf %298, %299 : vector<8x128xf32>
    %301 = vector.extract_strided_slice %294 {offsets = [0, 128], sizes = [8, 128], strides = [1, 1]} : vector<8x512xf32> to vector<8x128xf32>
    %302 = arith.negf %301 : vector<8x128xf32>
    %303 = math.exp %302 : vector<8x128xf32>
    %cst_103 = arith.constant 1.000000e+00 : f32
    %304 = vector.broadcast %cst_103 : f32 to vector<8x128xf32>
    %305 = arith.addf %304, %303 : vector<8x128xf32>
    %306 = arith.divf %304, %305 : vector<8x128xf32>
    %307 = vector.extract_strided_slice %294 {offsets = [0, 256], sizes = [8, 128], strides = [1, 1]} : vector<8x512xf32> to vector<8x128xf32>
    %308 = math.tanh %307 : vector<8x128xf32>
    %309 = vector.extract_strided_slice %294 {offsets = [0, 384], sizes = [8, 128], strides = [1, 1]} : vector<8x512xf32> to vector<8x128xf32>
    %310 = arith.negf %309 : vector<8x128xf32>
    %311 = math.exp %310 : vector<8x128xf32>
    %cst_104 = arith.constant 1.000000e+00 : f32
    %312 = vector.broadcast %cst_104 : f32 to vector<8x128xf32>
    %313 = arith.addf %312, %311 : vector<8x128xf32>
    %314 = arith.divf %312, %313 : vector<8x128xf32>
    %315 = arith.mulf %306, %279 : vector<8x128xf32>
    %316 = arith.mulf %300, %308 : vector<8x128xf32>
    %317 = arith.addf %315, %316 : vector<8x128xf32>
    %318 = math.tanh %317 : vector<8x128xf32>
    %319 = arith.mulf %314, %318 : vector<8x128xf32>
    %c8_i32_105 = arith.constant 8 : i32
    %320 = arith.muli %3, %c8_i32_105 : i32
    %321 = arith.addi %320, %288 : i32
    %c8_i32_106 = arith.constant 8 : i32
    %322 = arith.cmpi slt, %321, %c8_i32_106 : i32
    %323 = arith.select %322, %317, %279 : vector<8x128xf32>
    %324 = arith.select %322, %319, %280 : vector<8x128xf32>
    %c0_107 = arith.constant 0 : index
    %c0_108 = arith.constant 0 : index
    %325 = arith.index_cast %290 : i32 to index
    %c0_109 = arith.constant 0 : index
    %326 = vector.load %arg6[%c0_107, %c0_108, %325, %c0_109] : memref<1x1x64x128xf32, #tpu.memory_space<vmem>>, vector<1x1x8x128xf32>
    %327 = vector.shape_cast %326 : vector<1x1x8x128xf32> to vector<8x128xf32>
    %328 = vector.shape_cast %324 : vector<8x128xf32> to vector<1x1x8x128xf32>
    tpu.vector_store %arg6[%c0_107, %c0_108, %325, %c0_109], %328 {strides = array<i32>} : memref<1x1x64x128xf32, #tpu.memory_space<vmem>>, vector<1x1x8x128xf32>,
    %c7_i32_110 = arith.constant 7 : i32
    %c2_i32_111 = arith.constant 2 : i32
    %329 = arith.muli %c2_i32_111, %c7_i32_110 : i32
    %c7_i32_112 = arith.constant 7 : i32
    %330 = arith.subi %c7_i32_112, %329 : i32
    %331 = arith.muli %arg0, %330 : i32
    %332 = arith.addi %c7_i32_110, %331 : i32
    %c8_i32_113 = arith.constant 8 : i32
    %333 = arith.muli %332, %c8_i32_113 : i32
    %334 = tpu.assume_multiple %333, 8 : i32
    %335 = arith.index_cast %334 : i32 to index
    %c0_114 = arith.constant 0 : index
    %336 = vector.load %arg9[%335, %c0_114] : memref<64x512xf32, #tpu.memory_space<vmem>>, vector<8x512xf32>
    %cst_115 = arith.constant dense<0.000000e+00> : vector<8x512xf32>
    %337 = tpu.matmul %324, %18, %cst_115 {dimension_numbers = #tpu.dot_dimension_numbers<[1], [0], [0], [1], [0, 0, 1, 1], [], []>} : vector<8x128xf32>, vector<128x512xf32>, vector<8x512xf32> -> vector<8x512xf32>
    %338 = arith.addf %336, %337 : vector<8x512xf32>
    %339 = vector.extract_strided_slice %338 {offsets = [0, 0], sizes = [8, 128], strides = [1, 1]} : vector<8x512xf32> to vector<8x128xf32>
    %340 = arith.negf %339 : vector<8x128xf32>
    %341 = math.exp %340 : vector<8x128xf32>
    %cst_116 = arith.constant 1.000000e+00 : f32
    %342 = vector.broadcast %cst_116 : f32 to vector<8x128xf32>
    %343 = arith.addf %342, %341 : vector<8x128xf32>
    %344 = arith.divf %342, %343 : vector<8x128xf32>
    %345 = vector.extract_strided_slice %338 {offsets = [0, 128], sizes = [8, 128], strides = [1, 1]} : vector<8x512xf32> to vector<8x128xf32>
    %346 = arith.negf %345 : vector<8x128xf32>
    %347 = math.exp %346 : vector<8x128xf32>
    %cst_117 = arith.constant 1.000000e+00 : f32
    %348 = vector.broadcast %cst_117 : f32 to vector<8x128xf32>
    %349 = arith.addf %348, %347 : vector<8x128xf32>
    %350 = arith.divf %348, %349 : vector<8x128xf32>
    %351 = vector.extract_strided_slice %338 {offsets = [0, 256], sizes = [8, 128], strides = [1, 1]} : vector<8x512xf32> to vector<8x128xf32>
    %352 = math.tanh %351 : vector<8x128xf32>
    %353 = vector.extract_strided_slice %338 {offsets = [0, 384], sizes = [8, 128], strides = [1, 1]} : vector<8x512xf32> to vector<8x128xf32>
    %354 = arith.negf %353 : vector<8x128xf32>
    %355 = math.exp %354 : vector<8x128xf32>
    %cst_118 = arith.constant 1.000000e+00 : f32
    %356 = vector.broadcast %cst_118 : f32 to vector<8x128xf32>
    %357 = arith.addf %356, %355 : vector<8x128xf32>
    %358 = arith.divf %356, %357 : vector<8x128xf32>
    %359 = arith.mulf %350, %323 : vector<8x128xf32>
    %360 = arith.mulf %344, %352 : vector<8x128xf32>
    %361 = arith.addf %359, %360 : vector<8x128xf32>
    %362 = math.tanh %361 : vector<8x128xf32>
    %363 = arith.mulf %358, %362 : vector<8x128xf32>
    %c8_i32_119 = arith.constant 8 : i32
    %364 = arith.muli %3, %c8_i32_119 : i32
    %365 = arith.addi %364, %332 : i32
    %c8_i32_120 = arith.constant 8 : i32
    %366 = arith.cmpi slt, %365, %c8_i32_120 : i32
    %367 = arith.select %366, %361, %323 : vector<8x128xf32>
    %368 = arith.select %366, %363, %324 : vector<8x128xf32>
    %c0_121 = arith.constant 0 : index
    %c0_122 = arith.constant 0 : index
    %369 = arith.index_cast %334 : i32 to index
    %c0_123 = arith.constant 0 : index
    %370 = vector.load %arg6[%c0_121, %c0_122, %369, %c0_123] : memref<1x1x64x128xf32, #tpu.memory_space<vmem>>, vector<1x1x8x128xf32>
    %371 = vector.shape_cast %370 : vector<1x1x8x128xf32> to vector<8x128xf32>
    %372 = vector.shape_cast %368 : vector<8x128xf32> to vector<1x1x8x128xf32>
    tpu.vector_store %arg6[%c0_121, %c0_122, %369, %c0_123], %372 {strides = array<i32>} : memref<1x1x64x128xf32, #tpu.memory_space<vmem>>, vector<1x1x8x128xf32>,
    %c8_i32_124 = arith.constant 8 : i32
    %c0_125 = arith.constant 0 : index
    %c0_126 = arith.constant 0 : index
    %373 = vector.load %arg10[%c0_125, %c0_126] : memref<8x128xf32, #tpu.memory_space<vmem>>, vector<8x128xf32>
    tpu.vector_store %arg10[%c0_125, %c0_126], %368 {strides = array<i32>} : memref<8x128xf32, #tpu.memory_space<vmem>>, vector<8x128xf32>,
    %c0_127 = arith.constant 0 : index
    %c0_128 = arith.constant 0 : index
    %374 = vector.load %arg11[%c0_127, %c0_128] : memref<8x128xf32, #tpu.memory_space<vmem>>, vector<8x128xf32>
    tpu.vector_store %arg11[%c0_127, %c0_128], %367 {strides = array<i32>} : memref<8x128xf32, #tpu.memory_space<vmem>>, vector<8x128xf32>,
    %c0_129 = arith.constant 0 : index
    %c0_130 = arith.constant 0 : index
    %c0_131 = arith.constant 0 : index
    %375 = vector.load %arg7[%c0_129, %c0_130, %c0_131] : memref<1x8x128xf32, #tpu.memory_space<vmem>>, vector<1x8x128xf32>
    %376 = vector.shape_cast %375 : vector<1x8x128xf32> to vector<8x128xf32>
    %377 = vector.shape_cast %368 : vector<8x128xf32> to vector<1x8x128xf32>
    tpu.vector_store %arg7[%c0_129, %c0_130, %c0_131], %377 {strides = array<i32>} : memref<1x8x128xf32, #tpu.memory_space<vmem>>, vector<1x8x128xf32>,
    %c0_132 = arith.constant 0 : index
    %c0_133 = arith.constant 0 : index
    %c0_134 = arith.constant 0 : index
    %378 = vector.load %arg8[%c0_132, %c0_133, %c0_134] : memref<1x8x128xf32, #tpu.memory_space<vmem>>, vector<1x8x128xf32>
    %379 = vector.shape_cast %378 : vector<1x8x128xf32> to vector<8x128xf32>
    %380 = vector.shape_cast %367 : vector<8x128xf32> to vector<1x8x128xf32>
    tpu.vector_store %arg8[%c0_132, %c0_133, %c0_134], %380 {strides = array<i32>} : memref<1x8x128xf32, #tpu.memory_space<vmem>>, vector<1x8x128xf32>,
    return
  }
  func.func @transform_0(%arg0: i32, %arg1: i32) -> (i32, i32, i32) {
    %c2_i32 = arith.constant 2 : i32
    %0 = arith.muli %c2_i32, %arg1 : i32
    %c0_i32 = arith.constant 0 : i32
    %1 = arith.subi %c0_i32, %0 : i32
    %2 = arith.muli %arg0, %1 : i32
    %3 = arith.addi %arg1, %2 : i32
    %c0_i32_0 = arith.constant 0 : i32
    %c0_i32_1 = arith.constant 0 : i32
    %c0_i32_2 = arith.constant 0 : i32
    return %3, %c0_i32_0, %c0_i32_1 : i32, i32, i32
  }
  func.func @transform_1(%arg0: i32, %arg1: i32) -> (i32, i32, i32) {
    %c0_i32 = arith.constant 0 : i32
    %c0_i32_0 = arith.constant 0 : i32
    %c0_i32_1 = arith.constant 0 : i32
    return %arg0, %c0_i32, %c0_i32_0 : i32, i32, i32
  }
  func.func @transform_2(%arg0: i32, %arg1: i32) -> (i32, i32, i32) {
    %c0_i32 = arith.constant 0 : i32
    %c0_i32_0 = arith.constant 0 : i32
    %c0_i32_1 = arith.constant 0 : i32
    return %arg0, %c0_i32, %c0_i32_0 : i32, i32, i32
  }
  func.func @transform_3(%arg0: i32, %arg1: i32) -> (i32, i32, i32) {
    %c0_i32 = arith.constant 0 : i32
    %c0_i32_0 = arith.constant 0 : i32
    %c0_i32_1 = arith.constant 0 : i32
    return %arg0, %c0_i32, %c0_i32_0 : i32, i32, i32
  }
  func.func @transform_4(%arg0: i32, %arg1: i32) -> (i32, i32, i32, i32) {
    %c2_i32 = arith.constant 2 : i32
    %0 = arith.muli %c2_i32, %arg1 : i32
    %c0_i32 = arith.constant 0 : i32
    %1 = arith.subi %c0_i32, %0 : i32
    %2 = arith.muli %arg0, %1 : i32
    %3 = arith.addi %arg1, %2 : i32
    %c0_i32_0 = arith.constant 0 : i32
    %c0_i32_1 = arith.constant 0 : i32
    %c0_i32_2 = arith.constant 0 : i32
    return %arg0, %3, %c0_i32_0, %c0_i32_1 : i32, i32, i32, i32
  }
  func.func @transform_5(%arg0: i32, %arg1: i32) -> (i32, i32, i32) {
    %c0_i32 = arith.constant 0 : i32
    %c0_i32_0 = arith.constant 0 : i32
    %c0_i32_1 = arith.constant 0 : i32
    return %arg0, %c0_i32, %c0_i32_0 : i32, i32, i32
  }
  func.func @transform_6(%arg0: i32, %arg1: i32) -> (i32, i32, i32) {
    %c0_i32 = arith.constant 0 : i32
    %c0_i32_0 = arith.constant 0 : i32
    %c0_i32_1 = arith.constant 0 : i32
    return %arg0, %c0_i32, %c0_i32_0 : i32, i32, i32
  }
}

</mosaic_0001>

<bundles_post_ra>
// kernel: encoder_forward.2
= control target key start
LH: loop header
LB: loop body
LE: loop exit
PB: predicated region body
PF: predicated region fallthrough
CT: control target
= control target key end

     0   :  { %s3490_s21 = smov 0   ;;  %s3492_s22 = smov 0   ;;  %s4214_s0 = inlined_call_operand.vmem [shape: f32[1,64,128], index: 0, kind: input, shape index: {}]   ;;  %s4215_s1 = inlined_call_operand.vmem [shape: f32[2,128,512], index: 1, kind: input, shape index: {}]   ;;  %s4216_s2 = inlined_call_operand.vmem [shape: f32[2,128,512], index: 2, kind: input, shape index: {}]   ;;  %s4217_s3 = inlined_call_operand.vmem [shape: f32[2,1,512], index: 3, kind: input, shape index: {}]   ;;  %s4218_s4 = inlined_call_operand.vmem [shape: f32[2,1,64,128], index: 4, kind: output, shape index: {0}]   ;;  %s4219_s5 = inlined_call_operand.vmem [shape: f32[2,8,128], index: 5, kind: output, shape index: {1}]   ;;  %s4220_s6 = inlined_call_operand.vmem [shape: f32[2,8,128], index: 6, kind: output, shape index: {2}]  }
   0x1   :  { %s3494_s23 = smov 0  }
   0x2 LB: > { %s29_s24 = sadd.s32 1, %s3448_s22  ;;  %p2600_p0 = scmp.ge.s32.totalorder %s3452_s23, 1  ;;  %s3452_s23 = sphi %s3494_s23, %s17_s23   ;;  %s3448_s22 = sphi %s3492_s22, %s4222_s22   ;;  %s3444_s21 = sphi %s3490_s21, %s4221_s21  }
   0x3   : > { %p31_p1 = scmp.ge.s32.totalorder %s29_s24, 2  ;;  %p284_p2 = scmp.lt.s32.totalorder %s3452_s23, 3 }
   0x5   : > { %s4224_s24 = smov (%p31_p1, %s29_s24), 0  ;;  %p285_p3 = pnand %p2600_p0, %p284_p2 }
   0x6   : > { %p361_p4 = scmp.lt.s32.totalorder (!%p285_p3), %s3444_s21, 1  ;;  %v3454_v0 = vmov (!%p285_p3), 0.0   ;;  %s829_s10 = smul.u32 (!%p285_p3), 56, %s3444_s21 }
   0x7   : > { %288 = sbr.rel (%p285_p3) target bundleno = 2166 (0x876), region = 36  ;;  %568 = vmatprep.mubr.f32.mxu0 (!%p285_p3), %v3454_v0  ;;  %681 = vmatprep.mubr.f32.mxu1 (!%p285_p3), %v3454_v0 }
   0x8   : > { %s830_s11 = sshra.s32 (!%p285_p3), %s829_s10, 3  ;;  %s828_s14 = smul.u32 (!%p285_p3), 7, %s3444_s21 }
   0x9   : > { %s2674_s12 = sshll.u32 (!%p285_p3), %s830_s11, 5  ;;  %s1019_s7 = smul.u32 (!%p285_p3), 5, %s3444_s21 }
   0xa   : > { %s834_s13 = scalar_lea.vmem (!%p285_p3), [#allocation2], %s2674_s12  ;;  %p1011_p5 = scmp.lt.s32.totalorder (!%p285_p3), %s828_s14, 8 }
   0xb   : > { %s2695_s11 = smul.u32 (!%p285_p3), 24, %s3444_s21 }
   0xd   : > { %s2679_s12 = sadd.s32 (!%p285_p3), 16, %s2695_s11 }
   0xe   : > { %s3514_s25 = scalar_select %p361_p4, %s3444_s21, 1 }
   0xf   : > { %s1012_s15 = scalar_select %p1011_p5, 1, 0 }
  0x10   : > { %s2671_s26 = sshll.u32 %s3514_s25, 9  ;;  %s2605_s30 = sshll.u32 %s3514_s25, 2 }
  0x11   : > { %s3522_s29 = scalar_lea.vmem %s4215_s1, %s2671_s26  ;;  %s3587_s8 = scalar_lea.vmem %s4216_s2, %s2671_s26 }
  0x12   : > { %v419_v1 = vld [vmem:[%s3522_s29 + $0x8] sm:$0xff]  ;;  %v421_v3 = vld [vmem:[%s3522_s29 + $0x18] sm:$0xff]  ;;  %v418_v6 = vld [vmem:[%s3522_s29] sm:$0xff]  ;;  %s374_s9 = scalar_lea.vmem %s4217_s3, %s2605_s30  ;;  %s2673_s16 = sshll.u32 %s3514_s25, 6 }
  0x13   : > { %v423_v2 = vld [vmem:[%s3522_s29 + $0x28] sm:$0xff]  ;;  %v425_v5 = vld [vmem:[%s3522_s29 + $0x38] sm:$0xff]  ;;  %v422_v7 = vld [vmem:[%s3522_s29 + $0x20] sm:$0xff]  ;;  %s3887_s19 = scalar_lea.vmem %s4218_s4, %s2673_s16  ;;  %s2694_s26 = smul.u32 40, %s3444_s21 }
  0x14   : > { %v2701_v4 = vpack.c.bf16 %v423_v2, %v419_v1  ;;  %v2733_v8 = vpack.c.bf16 %v425_v5, %v421_v3  ;;  %v2703_v9 = vpack.c.bf16 %v422_v7, %v418_v6  ;;  %v420_v10 = vld [vmem:[%s3522_s29 + $0x10] sm:$0xff]  ;;  %v427_v12 = vld [vmem:[%s3522_s29 + $0x48] sm:$0xff]  ;;  %v429_v15 = vld [vmem:[%s3522_s29 + $0x58] sm:$0xff]  ;;  %s1017_s20 = scalar_lea.vmem %s3887_s19, %s829_s10  ;;  %s1210_s16 = smul.u32 3, %s3444_s21 }
  0x15   : > { %v424_v11 = vld [vmem:[%s3522_s29 + $0x30] sm:$0xff]  ;;  %v431_v14 = vld [vmem:[%s3522_s29 + $0x68] sm:$0xff]  ;;  %v433_v16 = vld [vmem:[%s3522_s29 + $0x78] sm:$0xff]  ;;  %s2676_s27 = sadd.s32 8, %s2694_s26  ;;  %s2477_s10 = scalar_lea.vmem %s3887_s19, %s2694_s26 }
  0x16   : > { %2702 = vmatprep.subr.bf16.mxu0 %v2701_v4  ;;  %v2735_v13 = vpack.c.bf16 %v424_v11, %v420_v10  ;;  %2734 = vmatprep.subr.bf16.mxu1 %v2733_v8  ;;  %v2705_v17 = vpack.c.bf16 %v431_v14, %v427_v12  ;;  %v2737_v18 = vpack.c.bf16 %v433_v16, %v429_v15  ;;  %v426_v19 = vld [vmem:[%s3522_s29 + $0x40] sm:$0xff]  ;;  %v428_v21 = vld [vmem:[%s3522_s29 + $0x50] sm:$0xff]  ;;  %v435_v24 = vld [vmem:[%s3522_s29 + $0x88] sm:$0xff]  ;;  %s1022_s28 = sshra.s32 %s2676_s27, 3  ;;  %s1211_s17 = sadd.s32 2, %s1210_s16 }
  0x17   : > { %2704 = vmatpush1.bf16.msra.mxu0 %v2703_v9  ;;  %v430_v20 = vld [vmem:[%s3522_s29 + $0x60] sm:$0xff]  ;;  %v432_v23 = vld [vmem:[%s3522_s29 + $0x70] sm:$0xff]  ;;  %v439_v25 = vld [vmem:[%s3522_s29 + $0xa8] sm:$0xff]  ;;  %p1393_p7 = scmp.lt.s32.totalorder %s1211_s17, 8  ;;  %s2681_s26 = sshll.u32 %s3444_s21, 3 }
  0x18   : > { %2736 = vmatpush1.bf16.msra.mxu1 %v2735_v13  ;;  %v2707_v22 = vpack.c.bf16 %v430_v20, %v426_v19  ;;  %2706 = vmatprep.subr.bf16.mxu0 %v2705_v17  ;;  %v2739_v26 = vpack.c.bf16 %v432_v23, %v428_v21  ;;  %v2709_v27 = vpack.c.bf16 %v439_v25, %v435_v24  ;;  %v437_v28 = vld [vmem:[%s3522_s29 + $0x98] sm:$0xff]  ;;  %v434_v30 = vld [vmem:[%s3522_s29 + $0x80] sm:$0xff]  ;;  %v436_v33 = vld [vmem:[%s3522_s29 + $0x90] sm:$0xff]  ;;  %s2682_s27 = sadd.s32 24, %s2681_s26  ;;  %s2696_s17 = smul.u32 4294967272, %s3444_s21 }
  0x19   : > { %2738 = vmatprep.subr.bf16.mxu1 %v2737_v18  ;;  %v441_v29 = vld [vmem:[%s3522_s29 + $0xb8] sm:$0xff]  ;;  %v438_v32 = vld [vmem:[%s3522_s29 + $0xa0] sm:$0xff]  ;;  %v440_v34 = vld [vmem:[%s3522_s29 + $0xb0] sm:$0xff]  ;;  %s1394_s18 = scalar_select %p1393_p7, 1, 0 }
  0x1a   : > { %v2741_v31 = vpack.c.bf16 %v441_v29, %v437_v28  ;;  %v2711_v35 = vpack.c.bf16 %v438_v32, %v434_v30  ;;  %v443_v36 = vld [vmem:[%s3522_s29 + $0xc8] sm:$0xff]  ;;  %v445_v38 = vld [vmem:[%s3522_s29 + $0xd8] sm:$0xff]  ;;  %v2743_v39 = vpack.c.bf16 %v440_v34, %v436_v33  ;;  %v442_v42 = vld [vmem:[%s3522_s29 + $0xc0] sm:$0xff] }
  0x1b   : > { %2708 = vmatpush1.bf16.msra.mxu0 %v2707_v22  ;;  %v447_v37 = vld [vmem:[%s3522_s29 + $0xe8] sm:$0xff]  ;;  %v449_v41 = vld [vmem:[%s3522_s29 + $0xf8] sm:$0xff]  ;;  %v446_v43 = vld [vmem:[%s3522_s29 + $0xe0] sm:$0xff] }
  0x1c   : > { %2740 = vmatpush1.bf16.msra.mxu1 %v2739_v26  ;;  %2710 = vmatprep.subr.bf16.mxu0 %v2709_v27  ;;  %v2713_v40 = vpack.c.bf16 %v447_v37, %v443_v36  ;;  %v2745_v44 = vpack.c.bf16 %v449_v41, %v445_v38  ;;  %v444_v45 = vld [vmem:[%s3522_s29 + $0xd0] sm:$0xff]  ;;  %v451_v47 = vld [vmem:[%s3522_s29 + $0x108] sm:$0xff]  ;;  %v453_v49 = vld [vmem:[%s3522_s29 + $0x118] sm:$0xff]  ;;  %v2715_v51 = vpack.c.bf16 %v446_v43, %v442_v42 }
  0x1d   : > { %2742 = vmatprep.subr.bf16.mxu1 %v2741_v31  ;;  %v448_v46 = vld [vmem:[%s3522_s29 + $0xf0] sm:$0xff]  ;;  %v455_v48 = vld [vmem:[%s3522_s29 + $0x128] sm:$0xff]  ;;  %v457_v50 = vld [vmem:[%s3522_s29 + $0x138] sm:$0xff] }
  0x1e   : > { %v2747_v52 = vpack.c.bf16 %v448_v46, %v444_v45  ;;  %v2717_v53 = vpack.c.bf16 %v455_v48, %v451_v47  ;;  %v450_v54 = vld [vmem:[%s3522_s29 + $0x100] sm:$0xff]  ;;  %v452_v56 = vld [vmem:[%s3522_s29 + $0x110] sm:$0xff]  ;;  %v2749_v57 = vpack.c.bf16 %v457_v50, %v453_v49  ;;  %v459_v59 = vld [vmem:[%s3522_s29 + $0x148] sm:$0xff] }
  0x1f   : > { %2712 = vmatpush1.bf16.msra.mxu0 %v2711_v35  ;;  %v454_v55 = vld [vmem:[%s3522_s29 + $0x120] sm:$0xff]  ;;  %v456_v58 = vld [vmem:[%s3522_s29 + $0x130] sm:$0xff]  ;;  %v463_v60 = vld [vmem:[%s3522_s29 + $0x168] sm:$0xff] }
  0x20   : > { %2744 = vmatpush1.bf16.msra.mxu1 %v2743_v39  ;;  %2714 = vmatprep.subr.bf16.mxu0 %v2713_v40  ;;  %v461_v61 = vld [vmem:[%s3522_s29 + $0x158] sm:$0xff]  ;;  %v2719_v63 = vpack.c.bf16 %v454_v55, %v450_v54  ;;  %v2751_v1 = vpack.c.bf16 %v456_v58, %v452_v56  ;;  %v2721_v2 = vpack.c.bf16 %v463_v60, %v459_v59  ;;  %v458_v3 = vld [vmem:[%s3522_s29 + $0x140] sm:$0xff]  ;;  %v460_v5 = vld [vmem:[%s3522_s29 + $0x150] sm:$0xff] }
  0x21   : > { %2746 = vmatprep.subr.bf16.mxu1 %v2745_v44  ;;  %v465_v62 = vld [vmem:[%s3522_s29 + $0x178] sm:$0xff]  ;;  %v462_v4 = vld [vmem:[%s3522_s29 + $0x160] sm:$0xff]  ;;  %v464_v7 = vld [vmem:[%s3522_s29 + $0x170] sm:$0xff] }
  0x22   : > { %v2753_v6 = vpack.c.bf16 %v465_v62, %v461_v61  ;;  %v467_v8 = vld [vmem:[%s3522_s29 + $0x188] sm:$0xff]  ;;  %v469_v10 = vld [vmem:[%s3522_s29 + $0x198] sm:$0xff]  ;;  %v2723_v12 = vpack.c.bf16 %v462_v4, %v458_v3  ;;  %v2755_v13 = vpack.c.bf16 %v464_v7, %v460_v5  ;;  %v466_v15 = vld [vmem:[%s3522_s29 + $0x180] sm:$0xff] }
  0x23   : > { %2716 = vmatpush1.bf16.msra.mxu0 %v2715_v51  ;;  %v471_v9 = vld [vmem:[%s3522_s29 + $0x1a8] sm:$0xff]  ;;  %v473_v11 = vld [vmem:[%s3522_s29 + $0x1b8] sm:$0xff]  ;;  %v470_v16 = vld [vmem:[%s3522_s29 + $0x1a0] sm:$0xff] }
  0x24   : > { %2748 = vmatpush1.bf16.msra.mxu1 %v2747_v52  ;;  %2718 = vmatprep.subr.bf16.mxu0 %v2717_v53  ;;  %v2725_v14 = vpack.c.bf16 %v471_v9, %v467_v8  ;;  %v468_v17 = vld [vmem:[%s3522_s29 + $0x190] sm:$0xff]  ;;  %v2757_v18 = vpack.c.bf16 %v473_v11, %v469_v10  ;;  %v475_v20 = vld [vmem:[%s3522_s29 + $0x1c8] sm:$0xff]  ;;  %v477_v22 = vld [vmem:[%s3522_s29 + $0x1d8] sm:$0xff]  ;;  %v2727_v24 = vpack.c.bf16 %v470_v16, %v466_v15 }
  0x25   : > { %2750 = vmatprep.subr.bf16.mxu1 %v2749_v57  ;;  %v472_v19 = vld [vmem:[%s3522_s29 + $0x1b0] sm:$0xff]  ;;  %v479_v21 = vld [vmem:[%s3522_s29 + $0x1e8] sm:$0xff]  ;;  %v481_v23 = vld [vmem:[%s3522_s29 + $0x1f8] sm:$0xff] }
  0x26   : > { %v2759_v25 = vpack.c.bf16 %v472_v19, %v468_v17  ;;  %v2729_v26 = vpack.c.bf16 %v479_v21, %v475_v20  ;;  %v474_v27 = vld [vmem:[%s3522_s29 + $0x1c0] sm:$0xff]  ;;  %v476_v29 = vld [vmem:[%s3522_s29 + $0x1d0] sm:$0xff]  ;;  %v2761_v30 = vpack.c.bf16 %v481_v23, %v477_v22  ;;  %v763_v32 = vld [vmem:[%s3587_s8 + $0x8] sm:$0xff] }
  0x27   : > { %2720 = vmatpush1.bf16.msra.mxu0 %v2719_v63  ;;  %v478_v28 = vld [vmem:[%s3522_s29 + $0x1e0] sm:$0xff]  ;;  %v480_v31 = vld [vmem:[%s3522_s29 + $0x1f0] sm:$0xff]  ;;  %v767_v33 = vld [vmem:[%s3587_s8 + $0x28] sm:$0xff]  ;;  %s2677_s29 = sshll.u32 %s1022_s28, 5  ;;  %s1403_s28 = sshra.s32 %s2682_s27, 3 }
  0x28   : > { %2752 = vmatpush1.bf16.msra.mxu1 %v2751_v1  ;;  %2722 = vmatprep.subr.bf16.mxu0 %v2721_v2  ;;  %v765_v34 = vld [vmem:[%s3587_s8 + $0x18] sm:$0xff]  ;;  %v2731_v36 = vpack.c.bf16 %v478_v28, %v474_v27  ;;  %v2763_v37 = vpack.c.bf16 %v480_v31, %v476_v29  ;;  %v3599_v38 = vpack.c.bf16 %v767_v33, %v763_v32  ;;  %v762_v39 = vld [vmem:[%s3587_s8] sm:$0xff]  ;;  %v764_v42 = vld [vmem:[%s3587_s8 + $0x10] sm:$0xff]  ;;  %s1026_s30 = scalar_lea.vmem [#allocation2], %s2677_s29  ;;  %s2683_s29 = sshll.u32 %s1403_s28, 5 }
  0x29   : > { %2754 = vmatprep.subr.bf16.mxu1 %v2753_v6  ;;  %v769_v35 = vld [vmem:[%s3587_s8 + $0x38] sm:$0xff]  ;;  %v766_v40 = vld [vmem:[%s3587_s8 + $0x20] sm:$0xff]  ;;  %v768_v43 = vld [vmem:[%s3587_s8 + $0x30] sm:$0xff]  ;;  %s1781_s28 = smul.u32 4294967293, %s3444_s21 }
  0x2a   : > { %v3603_v41 = vpack.c.bf16 %v769_v35, %v765_v34  ;;  %v771_v44 = vld [vmem:[%s3587_s8 + $0x48] sm:$0xff]  ;;  %v410_v46 = vld [vmem:[%s4214_s0] sm:$0xff]  ;;  %v773_v47 = vld [vmem:[%s3587_s8 + $0x58] sm:$0xff]  ;;  %v3615_v49 = vpack.c.bf16 %v766_v40, %v762_v39  ;;  %v3618_v50 = vpack.c.bf16 %v768_v43, %v764_v42 }
  0x2b   : > { %2724 = vmatpush1.bf16.msra.mxu0 %v2723_v12  ;;  %v775_v45 = vld [vmem:[%s3587_s8 + $0x68] sm:$0xff]  ;;  %v777_v48 = vld [vmem:[%s3587_s8 + $0x78] sm:$0xff]  ;;  %v770_v52 = vld [vmem:[%s3587_s8 + $0x40] sm:$0xff] }
  0x2c   : > { %2756 = vmatpush1.bf16.msra.mxu1 %v2755_v13  ;;  %2726 = vmatprep.subr.bf16.mxu0 %v2725_v14  ;;  %v3620_v51 = vpack.c.bf16 %v775_v45, %v771_v44  ;;  %v774_v53 = vld [vmem:[%s3587_s8 + $0x60] sm:$0xff]  ;;  %v772_v54 = vld [vmem:[%s3587_s8 + $0x50] sm:$0xff]  ;;  %v3625_v55 = vpack.c.bf16 %v777_v48, %v773_v47  ;;  %v779_v57 = vld [vmem:[%s3587_s8 + $0x88] sm:$0xff] }
  0x2d   : > { %2758 = vmatprep.subr.bf16.mxu1 %v2757_v18  ;;  %v776_v56 = vld [vmem:[%s3587_s8 + $0x70] sm:$0xff]  ;;  %v783_v58 = vld [vmem:[%s3587_s8 + $0xa8] sm:$0xff]  ;;  %v781_v60 = vld [vmem:[%s3587_s8 + $0x98] sm:$0xff]  ;;  %v3638_v62 = vpack.c.bf16 %v774_v53, %v770_v52 }
  0x2e   : > { %v411_v59 = vld [vmem:[%s4214_s0 + $0x8] sm:$0xff]  ;;  %v785_v61 = vld [vmem:[%s3587_s8 + $0xb8] sm:$0xff]  ;;  %v3642_v63 = vpack.c.bf16 %v776_v56, %v772_v54  ;;  %v3644_v1 = vpack.c.bf16 %v783_v58, %v779_v57  ;;  %v778_v2 = vld [vmem:[%s3587_s8 + $0x80] sm:$0xff] }
  0x2f   : > { %2728 = vmatpush1.bf16.msra.mxu0 %v2727_v24  ;;  %v782_v3 = vld [vmem:[%s3587_s8 + $0xa0] sm:$0xff]  ;;  %v780_v4 = vld [vmem:[%s3587_s8 + $0x90] sm:$0xff]  ;;  %v3650_v5 = vpack.c.bf16 %v785_v61, %v781_v60  ;;  %v787_v7 = vld [vmem:[%s3587_s8 + $0xc8] sm:$0xff] }
  0x30   : > { %2760 = vmatpush1.bf16.msra.mxu1 %v2759_v25  ;;  %2730 = vmatprep.subr.bf16.mxu0 %v2729_v26  ;;  %v784_v6 = vld [vmem:[%s3587_s8 + $0xb0] sm:$0xff]  ;;  %v791_v8 = vld [vmem:[%s3587_s8 + $0xe8] sm:$0xff]  ;;  %v789_v10 = vld [vmem:[%s3587_s8 + $0xd8] sm:$0xff]  ;;  %v3663_v12 = vpack.c.bf16 %v782_v3, %v778_v2 }
  0x31   : > { %2762 = vmatprep.subr.bf16.mxu1 %v2761_v30  ;;  %v412_v9 = vld [vmem:[%s4214_s0 + $0x10] sm:$0xff]  ;;  %v793_v11 = vld [vmem:[%s3587_s8 + $0xf8] sm:$0xff]  ;;  %v3667_v13 = vpack.c.bf16 %v784_v6, %v780_v4  ;;  %v3669_v14 = vpack.c.bf16 %v791_v8, %v787_v7  ;;  %v786_v15 = vld [vmem:[%s3587_s8 + $0xc0] sm:$0xff] }
  0x32   : > { %v790_v16 = vld [vmem:[%s3587_s8 + $0xe0] sm:$0xff]  ;;  %v788_v17 = vld [vmem:[%s3587_s8 + $0xd0] sm:$0xff]  ;;  %v3675_v18 = vpack.c.bf16 %v793_v11, %v789_v10  ;;  %v795_v20 = vld [vmem:[%s3587_s8 + $0x108] sm:$0xff] }
  0x33   : > { %2732 = vmatpush1.bf16.msra.mxu0 %v2731_v36  ;;  %v792_v19 = vld [vmem:[%s3587_s8 + $0xf0] sm:$0xff]  ;;  %v799_v21 = vld [vmem:[%s3587_s8 + $0x128] sm:$0xff]  ;;  %v413_v22 = vld [vmem:[%s4214_s0 + $0x18] sm:$0xff]  ;;  %v3688_v25 = vpack.c.bf16 %v790_v16, %v786_v15 }
  0x34   : > { %2764 = vmatpush1.bf16.msra.mxu1 %v2763_v37  ;;  %2766 = vmatprep.subr.bf16.mxu0 %v3599_v38  ;;  %v797_v23 = vld [vmem:[%s3587_s8 + $0x118] sm:$0xff]  ;;  %v3692_v26 = vpack.c.bf16 %v792_v19, %v788_v17  ;;  %v3694_v27 = vpack.c.bf16 %v799_v21, %v795_v20  ;;  %v794_v28 = vld [vmem:[%s3587_s8 + $0x100] sm:$0xff]  ;;  %v796_v30 = vld [vmem:[%s3587_s8 + $0x110] sm:$0xff] }
  0x35   : > { %2798 = vmatprep.subr.bf16.mxu1 %v3603_v41  ;;  %v801_v24 = vld [vmem:[%s3587_s8 + $0x138] sm:$0xff]  ;;  %v798_v29 = vld [vmem:[%s3587_s8 + $0x120] sm:$0xff]  ;;  %v800_v32 = vld [vmem:[%s3587_s8 + $0x130] sm:$0xff] }
  0x36   : > { %569 = vmatmul.mubr.f32.vlgmr.msra.gmra.mrb[0].mxu0 %v410_v46  ;;  %v3700_v31 = vpack.c.bf16 %v801_v24, %v797_v23  ;;  %v803_v33 = vld [vmem:[%s3587_s8 + $0x148] sm:$0xff]  ;;  %v414_v35 = vld [vmem:[%s4214_s0 + $0x20] sm:$0xff]  ;;  %v805_v36 = vld [vmem:[%s3587_s8 + $0x158] sm:$0xff]  ;;  %v3713_v39 = vpack.c.bf16 %v798_v29, %v794_v28  ;;  %v3717_v40 = vpack.c.bf16 %v800_v32, %v796_v30  ;;  %v484_v29 = vlaneseq }
  0x37   : > { %682 = vmatmul.mubr.f32.vlgmr.msra.gmra.mrb[0].mxu1 %v410_v46  ;;  %574 = vmatprep.mubr.f32.mxu0 %v3454_v0  ;;  %v807_v34 = vld [vmem:[%s3587_s8 + $0x168] sm:$0xff]  ;;  %v809_v37 = vld [vmem:[%s3587_s8 + $0x178] sm:$0xff]  ;;  %v802_v43 = vld [vmem:[%s3587_s8 + $0x140] sm:$0xff] }
  0x38   : > { %687 = vmatprep.mubr.f32.mxu1 %v3454_v0  ;;  %2768 = vmatpush1.bf16.msra.mxu0 %v3615_v49  ;;  %v3719_v42 = vpack.c.bf16 %v807_v34, %v803_v33  ;;  %v806_v44 = vld [vmem:[%s3587_s8 + $0x160] sm:$0xff]  ;;  %v804_v45 = vld [vmem:[%s3587_s8 + $0x150] sm:$0xff]  ;;  %v3725_v46 = vpack.c.bf16 %v809_v37, %v805_v36  ;;  %v811_v48 = vld [vmem:[%s3587_s8 + $0x188] sm:$0xff]  ;;  %v485_v30 = vshrl.u32 %v484_v29, 7 }
  0x39   : > { %2800 = vmatpush1.bf16.msra.mxu1 %v3618_v50  ;;  %2770 = vmatprep.subr.bf16.mxu0 %v3620_v51  ;;  %v808_v47 = vld [vmem:[%s3587_s8 + $0x170] sm:$0xff]  ;;  %v815_v52 = vld [vmem:[%s3587_s8 + $0x1a8] sm:$0xff]  ;;  %v813_v54 = vld [vmem:[%s3587_s8 + $0x198] sm:$0xff]  ;;  %v3738_v57 = vpack.c.bf16 %v806_v44, %v802_v43 }
  0x3a   : > { %575 = vmatmul.mubr.f32.gmra.mrb[2].mxu0 %v411_v59  ;;  %2802 = vmatprep.subr.bf16.mxu1 %v3625_v55  ;;  %v415_v53 = vld [vmem:[%s4214_s0 + $0x28] sm:$0xff]  ;;  %v817_v56 = vld [vmem:[%s3587_s8 + $0x1b8] sm:$0xff]  ;;  %v3742_v58 = vpack.c.bf16 %v808_v47, %v804_v45  ;;  %v810_v60 = vld [vmem:[%s3587_s8 + $0x180] sm:$0xff]  ;;  %v486_v32 = vsub.s32 0, %v485_v30  ;;  %v494_v34 = vsub.s32 2, %v485_v30  ;;  %v498_v36 = vsub.s32 3, %v485_v30 }
  0x3b   : > { %688 = vmatmul.mubr.f32.gmra.mrb[2].mxu1 %v411_v59  ;;  %580 = vmatprep.mubr.f32.mxu0 %v3454_v0  ;;  %v3744_v59 = vpack.c.bf16 %v815_v52, %v811_v48  ;;  %v814_v61 = vld [vmem:[%s3587_s8 + $0x1a0] sm:$0xff]  ;;  %v812_v2 = vld [vmem:[%s3587_s8 + $0x190] sm:$0xff]  ;;  %v3750_v3 = vpack.c.bf16 %v817_v56, %v813_v54  ;;  %v819_v6 = vld [vmem:[%s3587_s8 + $0x1c8] sm:$0xff] }
  0x3c   : > { %693 = vmatprep.mubr.f32.mxu1 %v3454_v0  ;;  %2772 = vmatpush1.bf16.msra.mxu0 %v3638_v62  ;;  %v816_v4 = vld [vmem:[%s3587_s8 + $0x1b0] sm:$0xff]  ;;  %v823_v7 = vld [vmem:[%s3587_s8 + $0x1e8] sm:$0xff]  ;;  %v825_v10 = vld [vmem:[%s3587_s8 + $0x1f8] sm:$0xff]  ;;  %v3763_v11 = vpack.c.bf16 %v814_v61, %v810_v60 }
  0x3d   : > { %2804 = vmatpush1.bf16.msra.mxu1 %v3642_v63  ;;  %2774 = vmatprep.subr.bf16.mxu0 %v3644_v1  ;;  %v416_v8 = vld [vmem:[%s4214_s0 + $0x30] sm:$0xff]  ;;  %v3767_v15 = vpack.c.bf16 %v816_v4, %v812_v2  ;;  %v3769_v16 = vpack.c.bf16 %v823_v7, %v819_v6  ;;  %v818_v17 = vld [vmem:[%s3587_s8 + $0x1c0] sm:$0xff]  ;;  %v417_v23 = vld [vmem:[%s4214_s0 + $0x38] sm:$0xff] }
  0x3e   : > { %581 = vmatmul.mubr.f32.gmra.mrb[4].mxu0 %v412_v9  ;;  %2806 = vmatprep.subr.bf16.mxu1 %v3650_v5  ;;  %v822_v19 = vld [vmem:[%s3587_s8 + $0x1e0] sm:$0xff]  ;;  %v820_v21 = vld [vmem:[%s3587_s8 + $0x1d0] sm:$0xff] }
  0x3f   : > { %694 = vmatmul.mubr.f32.gmra.mrb[4].mxu1 %v412_v9  ;;  %586 = vmatprep.mubr.f32.mxu0 %v3454_v0  ;;  %v821_v9 = vld [vmem:[%s3587_s8 + $0x1d8] sm:$0xff]  ;;  %v3784_v24 = vpack.c.bf16 %v822_v19, %v818_v17  ;;  %v482_v33 = vld [vmem:[%s374_s9] sm:$0xf] }
  0x40   : > { %699 = vmatprep.mubr.f32.mxu1 %v3454_v0  ;;  %2776 = vmatpush1.bf16.msra.mxu0 %v3663_v12  ;;  %v3774_v20 = vpack.c.bf16 %v825_v10, %v821_v9  ;;  %v3837_v37 = vrot.slane %v482_v33, %v486_v32  ;;  %v3839_v43 = vrot.slane %v482_v33, %v494_v34 }
  0x41   : > { %2808 = vmatpush1.bf16.msra.mxu1 %v3667_v13  ;;  %2778 = vmatprep.subr.bf16.mxu0 %v3669_v14  ;;  %v3843_v45 = vrot.slane %v482_v33, %v498_v36 }
  0x42   : > { %587 = vmatmul.mubr.f32.gmra.mrb[6].mxu0 %v413_v22  ;;  %2810 = vmatprep.subr.bf16.mxu1 %v3675_v18 }
  0x43   : > { %700 = vmatmul.mubr.f32.gmra.mrb[6].mxu1 %v413_v22  ;;  %592 = vmatprep.mubr.f32.mxu0 %v3454_v0  ;;  %v824_v22 = vld [vmem:[%s3587_s8 + $0x1f0] sm:$0xff]  ;;  %s1020_s8 = sadd.s32 1, %s1019_s7  ;;  %s1401_s7 = sadd.s32 3, %s3444_s21 }
  0x44   : > { %705 = vmatprep.mubr.f32.mxu1 %v3454_v0  ;;  %2780 = vmatpush1.bf16.msra.mxu0 %v3688_v25  ;;  %v3788_v28 = vpack.c.bf16 %v824_v22, %v820_v21  ;;  %p1202_p6 = scmp.lt.s32.totalorder %s1020_s8, 8  ;;  %p1583_p8 = scmp.lt.s32.totalorder %s1401_s7, 8 }
  0x45   : > { %2812 = vmatpush1.bf16.msra.mxu1 %v3692_v26  ;;  %2782 = vmatprep.subr.bf16.mxu0 %v3694_v27  ;;  %s2498_s7 = scalar_lea.vmem %s3887_s19, %s2696_s17 }
  0x46   : > { %593 = vmatmul.mubr.f32.gmra.mrb[8].mxu0 %v414_v35  ;;  %2814 = vmatprep.subr.bf16.mxu1 %v3700_v31  ;;  %s1203_s9 = scalar_select %p1202_p6, 1, 0 }
  0x47   : > { %706 = vmatmul.mubr.f32.gmra.mrb[8].mxu1 %v414_v35  ;;  %598 = vmatprep.mubr.f32.mxu0 %v3454_v0  ;;  %v490_v35 = vsub.s32 1, %v485_v30  ;;  %s1584_s8 = scalar_select %p1583_p8, 1, 0 }
  0x48   : > { %711 = vmatprep.mubr.f32.mxu1 %v3454_v0  ;;  %2784 = vmatpush1.bf16.msra.mxu0 %v3713_v39 }
  0x49   : > { %2816 = vmatpush1.bf16.msra.mxu1 %v3717_v40  ;;  %2786 = vmatprep.subr.bf16.mxu0 %v3719_v42  ;;  %v3841_v44 = vrot.slane %v482_v33, %v490_v35 }
  0x4a   : > { %599 = vmatmul.mubr.f32.gmra.mrb[10].mxu0 %v415_v53  ;;  %2818 = vmatprep.subr.bf16.mxu1 %v3725_v46 }
  0x4b   : > { %712 = vmatmul.mubr.f32.gmra.mrb[10].mxu1 %v415_v53  ;;  %604 = vmatprep.mubr.f32.mxu0 %v3454_v0 }
  0x4c   : > { %717 = vmatprep.mubr.f32.mxu1 %v3454_v0  ;;  %2788 = vmatpush1.bf16.msra.mxu0 %v3738_v57 }
  0x4d   : > { %2820 = vmatpush1.bf16.msra.mxu1 %v3742_v58  ;;  %2790 = vmatprep.subr.bf16.mxu0 %v3744_v59 }
  0x4e   : > { %605 = vmatmul.mubr.f32.gmra.mrb[12].mxu0 %v416_v8  ;;  %2822 = vmatprep.subr.bf16.mxu1 %v3750_v3 }
  0x4f   : > { %718 = vmatmul.mubr.f32.gmra.mrb[12].mxu1 %v416_v8  ;;  %610 = vmatprep.mubr.f32.mxu0 %v3454_v0 }
  0x50   : > { %723 = vmatprep.mubr.f32.mxu1 %v3454_v0  ;;  %2792 = vmatpush1.bf16.msra.mxu0 %v3763_v11 }
  0x51   : > { %2824 = vmatpush1.bf16.msra.mxu1 %v3767_v15  ;;  %2794 = vmatprep.subr.bf16.mxu0 %v3769_v16 }
  0x52   : > { %611 = vmatmul.mubr.f32.gmra.mrb[14].mxu0 %v417_v23  ;;  %2826 = vmatprep.subr.bf16.mxu1 %v3774_v20 }
  0x53   : > { %724 = vmatmul.mubr.f32.gmra.mrb[14].mxu1 %v417_v23  ;;  %903 = vmatprep.mubr.f32.mxu0 %v3454_v0 }
  0x54   : > { %2796 = vmatpush1.bf16.msra.mxu0 %v3784_v24  ;;  %974 = vmatprep.mubr.f32.mxu1 %v3454_v0 }
  0x55   : > { %2828 = vmatpush1.bf16.msra.mxu1 %v3788_v28  ;;  %2830 = vmatprep.subr.bf16.mxu0 %v3599_v38 }
  0x56   : > { %2862 = vmatprep.subr.bf16.mxu1 %v3603_v41 }
  0x57   : > { %904 = vmatmul.mubr.f32.vlgmr.msra.gmra.mrb[16].mxu0 %v3454_v0 }
  0x58   : > { %975 = vmatmul.mubr.f32.vlgmr.msra.gmra.mrb[16].mxu1 %v3454_v0  ;;  %2832 = vmatpush1.bf16.msra.mxu0 %v3615_v49 }
  0x59   : > { %2864 = vmatpush1.bf16.msra.mxu1 %v3618_v50  ;;  %2834 = vmatprep.subr.bf16.mxu0 %v3620_v51 }
  0x5a   : > { %2866 = vmatprep.subr.bf16.mxu1 %v3625_v55  ;;  %1095 = vmatprep.mubr.f32.mxu0 %v3454_v0 }
  0x5b   : > { %1166 = vmatprep.mubr.f32.mxu1 %v3454_v0 }
  0x5c   : > { %2836 = vmatpush1.bf16.msra.mxu0 %v3638_v62 }
  0x5d   : > { %2868 = vmatpush1.bf16.msra.mxu1 %v3642_v63  ;;  %2838 = vmatprep.subr.bf16.mxu0 %v3644_v1 }
  0x5e   : > { %2870 = vmatprep.subr.bf16.mxu1 %v3650_v5 }
  0x60   : > { %2840 = vmatpush1.bf16.msra.mxu0 %v3663_v12 }
  0x61   : > { %2872 = vmatpush1.bf16.msra.mxu1 %v3667_v13  ;;  %2842 = vmatprep.subr.bf16.mxu0 %v3669_v14 }
  0x62   : > { %2874 = vmatprep.subr.bf16.mxu1 %v3675_v18 }
  0x64   : > { %2844 = vmatpush1.bf16.msra.mxu0 %v3688_v25 }
  0x65   : > { %2876 = vmatpush1.bf16.msra.mxu1 %v3692_v26  ;;  %2846 = vmatprep.subr.bf16.mxu0 %v3694_v27 }
  0x66   : > { %2878 = vmatprep.subr.bf16.mxu1 %v3700_v31 }
  0x68   : > { %2848 = vmatpush1.bf16.msra.mxu0 %v3713_v39 }
  0x69   : > { %2880 = vmatpush1.bf16.msra.mxu1 %v3717_v40  ;;  %2850 = vmatprep.subr.bf16.mxu0 %v3719_v42 }
  0x6a   : > { %2882 = vmatprep.subr.bf16.mxu1 %v3725_v46 }
  0x6c   : > { %2852 = vmatpush1.bf16.msra.mxu0 %v3738_v57 }
  0x6d   : > { %2884 = vmatpush1.bf16.msra.mxu1 %v3742_v58  ;;  %2854 = vmatprep.subr.bf16.mxu0 %v3744_v59 }
  0x6e   : > { %2886 = vmatprep.subr.bf16.mxu1 %v3750_v3 }
  0x70   : > { %2856 = vmatpush1.bf16.msra.mxu0 %v3763_v11 }
  0x71   : > { %2888 = vmatpush1.bf16.msra.mxu1 %v3767_v15  ;;  %2858 = vmatprep.subr.bf16.mxu0 %v3769_v16 }
  0x72   : > { %2890 = vmatprep.subr.bf16.mxu1 %v3774_v20 }
  0x74   : > { %2860 = vmatpush1.bf16.msra.mxu0 %v3784_v24 }
  0x75   : > { %2892 = vmatpush1.bf16.msra.mxu1 %v3788_v28  ;;  %2894 = vmatprep.subr.bf16.mxu0 %v3599_v38 }
  0x76   : > { %2926 = vmatprep.subr.bf16.mxu1 %v3603_v41 }
 0x109   : > { %v570_v47 = vpop.f32.mrb[0].mxu0 }
 0x10a   : > { %v571_v48 = vadd.f32 %v570_v47, %v3837_v37  ;;  %v683_v52 = vpop.f32.mrb[0].mxu1  ;;  %v572_v53 = vpop.f32.mrb[1].mxu0 }
 0x10b   : > { %v684_v54 = vadd.f32 %v683_v52, %v3839_v43  ;;  %v573_v56 = vadd.f32 %v572_v53, %v3841_v44  ;;  %v685_v60 = vpop.f32.mrb[1].mxu1 }
 0x10c   : > { %730 = vst [vmem:[#allocation2] sm:$0xff] %v571_v48  ;;  %v686_v61 = vadd.f32 %v685_v60, %v3843_v45 }
 0x10d   : > { %732 = vst [vmem:[#allocation2 + $0x10] sm:$0xff] %v684_v54  ;;  %731 = vst [vmem:[#allocation2 + $0x8] sm:$0xff] %v573_v56  ;;  %v576_v2 = vpop.f32.mrb[2].mxu0 }
 0x10e   : > { %733 = vst [vmem:[#allocation2 + $0x18] sm:$0xff] %v686_v61  ;;  %v577_v4 = vadd.f32 %v576_v2, %v3837_v37  ;;  %v689_v6 = vpop.f32.mrb[2].mxu1  ;;  %v578_v7 = vpop.f32.mrb[3].mxu0 }
 0x10f   : > { %v690_v8 = vadd.f32 %v689_v6, %v3839_v43  ;;  %v579_v9 = vadd.f32 %v578_v7, %v3841_v44  ;;  %v691_v10 = vpop.f32.mrb[3].mxu1 }
 0x110   : > { %734 = vst [vmem:[#allocation2 + $0x20] sm:$0xff] %v577_v4  ;;  %v692_v17 = vadd.f32 %v691_v10, %v3843_v45 }
 0x111   : > { %736 = vst [vmem:[#allocation2 + $0x30] sm:$0xff] %v690_v8  ;;  %735 = vst [vmem:[#allocation2 + $0x28] sm:$0xff] %v579_v9  ;;  %v582_v19 = vpop.f32.mrb[4].mxu0 }
 0x112   : > { %737 = vst [vmem:[#allocation2 + $0x38] sm:$0xff] %v692_v17  ;;  %v583_v21 = vadd.f32 %v582_v19, %v3837_v37  ;;  %v695_v22 = vpop.f32.mrb[4].mxu1  ;;  %v584_v23 = vpop.f32.mrb[5].mxu0 }
 0x113   : > { %v696_v29 = vadd.f32 %v695_v22, %v3839_v43  ;;  %v585_v30 = vadd.f32 %v584_v23, %v3841_v44  ;;  %v697_v32 = vpop.f32.mrb[5].mxu1 }
 0x114   : > { %738 = vst [vmem:[#allocation2 + $0x40] sm:$0xff] %v583_v21  ;;  %v698_v33 = vadd.f32 %v697_v32, %v3843_v45 }
 0x115   : > { %740 = vst [vmem:[#allocation2 + $0x50] sm:$0xff] %v696_v29  ;;  %739 = vst [vmem:[#allocation2 + $0x48] sm:$0xff] %v585_v30  ;;  %v588_v34 = vpop.f32.mrb[6].mxu0 }
 0x116   : > { %741 = vst [vmem:[#allocation2 + $0x58] sm:$0xff] %v698_v33  ;;  %v589_v35 = vadd.f32 %v588_v34, %v3837_v37  ;;  %v701_v36 = vpop.f32.mrb[6].mxu1  ;;  %v590_v47 = vpop.f32.mrb[7].mxu0 }
 0x117   : > { %v702_v48 = vadd.f32 %v701_v36, %v3839_v43  ;;  %v591_v52 = vadd.f32 %v590_v47, %v3841_v44  ;;  %v703_v53 = vpop.f32.mrb[7].mxu1 }
 0x118   : > { %742 = vst [vmem:[#allocation2 + $0x60] sm:$0xff] %v589_v35  ;;  %v704_v54 = vadd.f32 %v703_v53, %v3843_v45 }
 0x119   : > { %744 = vst [vmem:[#allocation2 + $0x70] sm:$0xff] %v702_v48  ;;  %743 = vst [vmem:[#allocation2 + $0x68] sm:$0xff] %v591_v52  ;;  %v594_v56 = vpop.f32.mrb[8].mxu0 }
 0x11a   : > { %745 = vst [vmem:[#allocation2 + $0x78] sm:$0xff] %v704_v54  ;;  %v595_v60 = vadd.f32 %v594_v56, %v3837_v37  ;;  %v707_v61 = vpop.f32.mrb[8].mxu1  ;;  %v596_v2 = vpop.f32.mrb[9].mxu0 }
 0x11b   : > { %v708_v4 = vadd.f32 %v707_v61, %v3839_v43  ;;  %v597_v6 = vadd.f32 %v596_v2, %v3841_v44  ;;  %v709_v7 = vpop.f32.mrb[9].mxu1 }
 0x11c   : > { %746 = vst [vmem:[#allocation2 + $0x80] sm:$0xff] %v595_v60  ;;  %v710_v8 = vadd.f32 %v709_v7, %v3843_v45 }
 0x11d   : > { %748 = vst [vmem:[#allocation2 + $0x90] sm:$0xff] %v708_v4  ;;  %747 = vst [vmem:[#allocation2 + $0x88] sm:$0xff] %v597_v6  ;;  %v600_v9 = vpop.f32.mrb[10].mxu0 }
 0x11e   : > { %749 = vst [vmem:[#allocation2 + $0x98] sm:$0xff] %v710_v8  ;;  %v601_v10 = vadd.f32 %v600_v9, %v3837_v37  ;;  %v713_v17 = vpop.f32.mrb[10].mxu1  ;;  %v602_v19 = vpop.f32.mrb[11].mxu0 }
 0x11f   : > { %v714_v21 = vadd.f32 %v713_v17, %v3839_v43  ;;  %v603_v22 = vadd.f32 %v602_v19, %v3841_v44  ;;  %v715_v23 = vpop.f32.mrb[11].mxu1 }
 0x120   : > { %750 = vst [vmem:[#allocation2 + $0xa0] sm:$0xff] %v601_v10  ;;  %v716_v29 = vadd.f32 %v715_v23, %v3843_v45 }
 0x121   : > { %752 = vst [vmem:[#allocation2 + $0xb0] sm:$0xff] %v714_v21  ;;  %751 = vst [vmem:[#allocation2 + $0xa8] sm:$0xff] %v603_v22  ;;  %v606_v30 = vpop.f32.mrb[12].mxu0 }
 0x122   : > { %753 = vst [vmem:[#allocation2 + $0xb8] sm:$0xff] %v716_v29  ;;  %v607_v32 = vadd.f32 %v606_v30, %v3837_v37  ;;  %v719_v33 = vpop.f32.mrb[12].mxu1  ;;  %v608_v34 = vpop.f32.mrb[13].mxu0 }
 0x123   : > { %v720_v35 = vadd.f32 %v719_v33, %v3839_v43  ;;  %v609_v36 = vadd.f32 %v608_v34, %v3841_v44  ;;  %v721_v47 = vpop.f32.mrb[13].mxu1 }
 0x124   : > { %754 = vst [vmem:[#allocation2 + $0xc0] sm:$0xff] %v607_v32  ;;  %v722_v48 = vadd.f32 %v721_v47, %v3843_v45 }
 0x125   : > { %756 = vst [vmem:[#allocation2 + $0xd0] sm:$0xff] %v720_v35  ;;  %755 = vst [vmem:[#allocation2 + $0xc8] sm:$0xff] %v609_v36  ;;  %v612_v52 = vpop.f32.mrb[14].mxu0 }
 0x126   : > { %757 = vst [vmem:[#allocation2 + $0xd8] sm:$0xff] %v722_v48  ;;  %v613_v53 = vadd.f32 %v612_v52, %v3837_v37  ;;  %v725_v54 = vpop.f32.mrb[14].mxu1  ;;  %v614_v56 = vpop.f32.mrb[15].mxu0  ;;  %v1013_v48 = vstv %s1012_s15 }
 0x127   : > { %v726_v60 = vadd.f32 %v725_v54, %v3839_v43  ;;  %v615_v61 = vadd.f32 %v614_v56, %v3841_v44  ;;  %v727_v2 = vpop.f32.mrb[15].mxu1  ;;  %vm1014_vm0 = vcmp.eq.s32.totalorder %v1013_v48, 1 }
 0x128   : > { %758 = vst [vmem:[#allocation2 + $0xe0] sm:$0xff] %v613_v53  ;;  %v728_v4 = vadd.f32 %v727_v2, %v3843_v45 }
 0x129   : > { %760 = vst [vmem:[#allocation2 + $0xf0] sm:$0xff] %v726_v60  ;;  %759 = vst [vmem:[#allocation2 + $0xe8] sm:$0xff] %v615_v61 }
 0x12a   : > { %761 = vst [vmem:[#allocation2 + $0xf8] sm:$0xff] %v728_v4  ;;  %v905_v6 = vpop.f32.mrb[16].mxu0 }
 0x12b   : > { %v907_v7 = vpop.f32.mrb[17].mxu0  ;;  %v976_v8 = vpop.f32.mrb[16].mxu1 }
 0x12c   : > { %v978_v37 = vpop.f32.mrb[17].mxu1 }
 0x131   : > { %v835_v9 = vld [vmem:[%s834_s13] sm:$0xff]  ;;  %v836_v10 = vld [vmem:[%s834_s13 + $0x8] sm:$0xff]  ;;  %v838_v45 = vld [vmem:[%s834_s13 + $0x18] sm:$0xff] }
 0x132   : > { %v981_v43 = vadd.f32 %v905_v6, %v835_v9  ;;  %v982_v44 = vadd.f32 %v907_v7, %v836_v10  ;;  %v984_v21 = vadd.f32 %v978_v37, %v838_v45  ;;  %v837_v22 = vld [vmem:[%s834_s13 + $0x10] sm:$0xff]  ;;  %s1213_s13 = sshra.s32 %s2679_s12, 3 }
 0x133   : > { %v983_v29 = vadd.f32 %v976_v8, %v837_v22  ;;  %v1027_v8 = vld [vmem:[%s1026_s30] sm:$0xff]  ;;  %v1030_v22 = vld [vmem:[%s1026_s30 + $0x18] sm:$0xff]  ;;  %s2680_s14 = sshll.u32 %s1213_s13, 5 }
 0x134   : > { %v2612_v17 = vmul.f32 -1.442695, %v981_v43  ;;  %v2613_v19 = vmul.f32 -1.442695, %v982_v44  ;;  %v2614_v23 = vmul.f32 -1.442695, %v984_v21 }
 0x135   : > { %v1028_v43 = vld [vmem:[%s1026_s30 + $0x8] sm:$0xff]  ;;  %s1217_s15 = scalar_lea.vmem [#allocation2], %s2680_s14 }
 0x136   : > { %3302 = vpow2.f32 %v2612_v17 }
 0x137   : > { %3304 = vpow2.f32 %v2613_v19 }
 0x138   : > { %3306 = vpow2.f32 %v2614_v23 }
 0x139   : > { %3308 = vtanh.f32 %v983_v29  ;;  %v1029_v29 = vld [vmem:[%s1026_s30 + $0x10] sm:$0xff]  ;;  %s1407_s30 = scalar_lea.vmem [#allocation2], %s2683_s29  ;;  %s1782_s29 = sadd.s32 5, %s1781_s28 }
 0x13a   : > { %p1964_p10 = scmp.lt.s32.totalorder %s1782_s29, 8  ;;  %s2163_s28 = smul.u32 4294967289, %s3444_s21 }
 0x13c   : > { %s2164_s29 = sadd.s32 7, %s2163_s28 }
 0x13d   : > { %p2346_p12 = scmp.lt.s32.totalorder %s2164_s29, 8 }
 0x140   : > { %v3303_v30 = vpop.eup %3302 }
 0x141   : > { %v3305_v32 = vpop.eup %3304  ;;  %v988_v33 = vadd.f32 1.0, %v3303_v30 }
 0x142   : > { %v994_v34 = vadd.f32 1.0, %v3305_v32  ;;  %v3307_v35 = vpop.eup %3306 }
 0x143   : > { %3310 = vrcp.f32 %v988_v33  ;;  %v3309_v36 = vpop.eup %3308  ;;  %v1001_v54 = vadd.f32 1.0, %v3307_v35 }
 0x144   : > { %3312 = vrcp.f32 %v994_v34 }
 0x145   : > { %3314 = vrcp.f32 %v1001_v54 }
 0x14d   : > { %v3311_v47 = vpop.eup %3310 }
 0x14e   : > { %v3313_v52 = vpop.eup %3312  ;;  %v1005_v53 = vmul.f32 %v3311_v47, %v3309_v36 }
 0x14f   : > { %v1004_v56 = vmul.f32 0.0, %v3313_v52  ;;  %v3315_v2 = vpop.eup %3314 }
 0x151   : > { %v1006_v60 = vadd.f32 %v1005_v53, %v1004_v56  ;;  %v1204_v53 = vstv %s1203_s9  ;;  %s2488_s9 = scalar_lea.vmem %s3887_s19, %s2681_s26 }
 0x152   : > { %vm1205_vm1 = vcmp.eq.s32.totalorder %v1204_v53, 1 }
 0x153   : > { %3316 = vtanh.f32 %v1006_v60  ;;  %v3881_v61 = vsel %vm1014_vm0, %v1006_v60, 0.0 }
 0x15d   : > { %v3317_v4 = vpop.eup %3316 }
 0x15e   : > { %v1008_v6 = vmul.f32 %v3317_v4, %v3315_v2 }
 0x160   : > { %2699 = vmatmul.mubr.msk.f32.vlgmr.msra.gmra.mrb[18].mxu0 %vm1014_vm0, %v1008_v6  ;;  %2700 = vmatmul.mubr.msk.f32.vlgmr.msra.gmra.mrb[18].mxu1 %vm1014_vm0, %v1008_v6  ;;  %v3892_v7 = vsel %vm1014_vm0, %v1008_v6, 0.0 }
 0x161   : > { %2896 = vmatpush1.bf16.msra.mxu0 %v3615_v49  ;;  %2928 = vmatpush1.bf16.msra.mxu1 %v3618_v50  ;;  %1018 = vst [vmem:[%s1017_s20] sm:$0xff] %v3892_v7  ;;  %s2483_s20 = scalar_lea.vmem %s3887_s19, %s2695_s11 }
 0x162   : > { %2898 = vmatprep.subr.bf16.mxu0 %v3620_v51  ;;  %2930 = vmatprep.subr.bf16.mxu1 %v3625_v55 }
 0x163   : > { %1286 = vmatprep.mubr.f32.mxu0 %v3454_v0  ;;  %1357 = vmatprep.mubr.f32.mxu1 %v3454_v0 }
 0x165   : > { %2900 = vmatpush1.bf16.msra.mxu0 %v3638_v62  ;;  %2932 = vmatpush1.bf16.msra.mxu1 %v3642_v63 }
 0x166   : > { %2902 = vmatprep.subr.bf16.mxu0 %v3644_v1  ;;  %2934 = vmatprep.subr.bf16.mxu1 %v3650_v5 }
 0x169   : > { %2904 = vmatpush1.bf16.msra.mxu0 %v3663_v12  ;;  %2936 = vmatpush1.bf16.msra.mxu1 %v3667_v13 }
 0x16a   : > { %2906 = vmatprep.subr.bf16.mxu0 %v3669_v14  ;;  %2938 = vmatprep.subr.bf16.mxu1 %v3675_v18 }
 0x16d   : > { %2908 = vmatpush1.bf16.msra.mxu0 %v3688_v25  ;;  %2940 = vmatpush1.bf16.msra.mxu1 %v3692_v26 }
 0x16e   : > { %2910 = vmatprep.subr.bf16.mxu0 %v3694_v27  ;;  %2942 = vmatprep.subr.bf16.mxu1 %v3700_v31 }
 0x171   : > { %2912 = vmatpush1.bf16.msra.mxu0 %v3713_v39  ;;  %2944 = vmatpush1.bf16.msra.mxu1 %v3717_v40 }
 0x172   : > { %2914 = vmatprep.subr.bf16.mxu0 %v3719_v42  ;;  %2946 = vmatprep.subr.bf16.mxu1 %v3725_v46 }
 0x175   : > { %2916 = vmatpush1.bf16.msra.mxu0 %v3738_v57  ;;  %2948 = vmatpush1.bf16.msra.mxu1 %v3742_v58 }
 0x176   : > { %2918 = vmatprep.subr.bf16.mxu0 %v3744_v59  ;;  %2950 = vmatprep.subr.bf16.mxu1 %v3750_v3 }
 0x179   : > { %2920 = vmatpush1.bf16.msra.mxu0 %v3763_v11  ;;  %2952 = vmatpush1.bf16.msra.mxu1 %v3767_v15 }
 0x17a   : > { %2922 = vmatprep.subr.bf16.mxu0 %v3769_v16  ;;  %2954 = vmatprep.subr.bf16.mxu1 %v3774_v20 }
 0x17d   : > { %2924 = vmatpush1.bf16.msra.mxu0 %v3784_v24  ;;  %2956 = vmatpush1.bf16.msra.mxu1 %v3788_v28 }
 0x17e   : > { %2958 = vmatprep.subr.bf16.mxu0 %v3599_v38  ;;  %2990 = vmatprep.subr.bf16.mxu1 %v3603_v41 }
 0x233   : > { %v1097_v37 = vpop.f32.mrb[18].mxu0  ;;  %v1168_v9 = vpop.f32.mrb[18].mxu1 }
 0x234   : > { %v1173_v10 = vadd.f32 %v1097_v37, %v1027_v8  ;;  %v1099_v44 = vpop.f32.mrb[19].mxu0  ;;  %v1170_v17 = vpop.f32.mrb[19].mxu1  ;;  %v1175_v32 = vadd.f32 %v1168_v9, %v1029_v29  ;;  %v1221_v29 = vld [vmem:[%s1217_s15 + $0x18] sm:$0xff] }
 0x235   : > { %v1174_v19 = vadd.f32 %v1099_v44, %v1028_v43  ;;  %v1176_v23 = vadd.f32 %v1170_v17, %v1030_v22  ;;  %v1219_v17 = vld [vmem:[%s1217_s15 + $0x8] sm:$0xff] }
 0x236   : > { %v2618_v45 = vmul.f32 -1.442695, %v1173_v10 }
 0x237   : > { %v2619_v21 = vmul.f32 -1.442695, %v1174_v19  ;;  %v2620_v30 = vmul.f32 -1.442695, %v1176_v23 }
 0x238   : > { %3318 = vpow2.f32 %v2618_v45 }
 0x239   : > { %3320 = vpow2.f32 %v2619_v21 }
 0x23a   : > { %3322 = vpow2.f32 %v2620_v30 }
 0x23b   : > { %3324 = vtanh.f32 %v1175_v32  ;;  %v1220_v32 = vld [vmem:[%s1217_s15 + $0x10] sm:$0xff] }
 0x242   : > { %v3319_v33 = vpop.eup %3318 }
 0x243   : > { %v3321_v34 = vpop.eup %3320  ;;  %v1180_v35 = vadd.f32 1.0, %v3319_v33 }
 0x244   : > { %v1186_v36 = vadd.f32 1.0, %v3321_v34  ;;  %v3323_v47 = vpop.eup %3322 }
 0x245   : > { %3326 = vrcp.f32 %v1180_v35  ;;  %v3325_v48 = vpop.eup %3324  ;;  %v1193_v60 = vadd.f32 1.0, %v3323_v47 }
 0x246   : > { %3328 = vrcp.f32 %v1186_v36 }
 0x247   : > { %3330 = vrcp.f32 %v1193_v60 }
 0x24f   : > { %v3327_v52 = vpop.eup %3326 }
 0x250   : > { %v3329_v54 = vpop.eup %3328  ;;  %v1197_v56 = vmul.f32 %v3327_v52, %v3325_v48 }
 0x251   : > { %v1196_v2 = vmul.f32 %v3329_v54, %v3881_v61  ;;  %v3331_v8 = vpop.eup %3330 }
 0x253   : > { %v1198_v4 = vadd.f32 %v1197_v56, %v1196_v2  ;;  %v1395_v56 = vstv %s1394_s18  ;;  %s2686_s18 = sadd.s32 40, %s2696_s17  ;;  %s2698_s17 = smul.u32 4294967240, %s3444_s21 }
 0x254   : > { %vm1396_vm2 = vcmp.eq.s32.totalorder %v1395_v56, 1 }
 0x255   : > { %3332 = vtanh.f32 %v1198_v4  ;;  %v3935_v6 = vsel %vm1205_vm1, %v1198_v4, %v3881_v61  ;;  %v1218_v61 = vld [vmem:[%s1217_s15] sm:$0xff] }
 0x25f   : > { %v3333_v37 = vpop.eup %3332 }
 0x260   : > { %v1200_v9 = vmul.f32 %v3333_v37, %v3331_v8 }
 0x262   : > { %v3941_v10 = vsel %vm1205_vm1, %v1200_v9, %v3892_v7 }
 0x263   : > { %2622 = vst [vmem:[%s2477_s10 + $0x8] sm:$0xff] %v3941_v10  ;;  %1287 = vmatmul.mubr.f32.vlgmr.msra.gmra.mrb[20].mxu0 %v3941_v10  ;;  %1358 = vmatmul.mubr.f32.vlgmr.msra.gmra.mrb[20].mxu1 %v3941_v10  ;;  %s1591_s10 = ssub.s32 4, %s3444_s21 }
 0x264   : > { %2960 = vmatpush1.bf16.msra.mxu0 %v3615_v49  ;;  %2992 = vmatpush1.bf16.msra.mxu1 %v3618_v50  ;;  %s4083_s11 = sshll.u32 %s1591_s10, 3  ;;  %p1773_p9 = scmp.lt.s32.totalorder %s1591_s10, 8 }
 0x265   : > { %2962 = vmatprep.subr.bf16.mxu0 %v3620_v51  ;;  %2994 = vmatprep.subr.bf16.mxu1 %v3625_v55  ;;  %s1593_s12 = sshra.s32 %s4083_s11, 3  ;;  %s1779_s16 = scalar_lea.vmem %s3887_s19, %s4083_s11 }
 0x266   : > { %1476 = vmatprep.mubr.f32.mxu0 %v3454_v0  ;;  %1547 = vmatprep.mubr.f32.mxu1 %v3454_v0  ;;  %s2684_s13 = sshll.u32 %s1593_s12, 5 }
 0x267   : > { %s1597_s14 = scalar_lea.vmem [#allocation2], %s2684_s13  ;;  %s1972_s13 = smul.u32 4294967291, %s3444_s21 }
 0x268   : > { %2964 = vmatpush1.bf16.msra.mxu0 %v3638_v62  ;;  %2996 = vmatpush1.bf16.msra.mxu1 %v3642_v63  ;;  %s1774_s15 = scalar_select %p1773_p9, 1, 0 }
 0x269   : > { %2966 = vmatprep.subr.bf16.mxu0 %v3644_v1  ;;  %2998 = vmatprep.subr.bf16.mxu1 %v3650_v5 }
 0x26c   : > { %2968 = vmatpush1.bf16.msra.mxu0 %v3663_v12  ;;  %3000 = vmatpush1.bf16.msra.mxu1 %v3667_v13 }
 0x26d   : > { %2970 = vmatprep.subr.bf16.mxu0 %v3669_v14  ;;  %3002 = vmatprep.subr.bf16.mxu1 %v3675_v18 }
 0x270   : > { %2972 = vmatpush1.bf16.msra.mxu0 %v3688_v25  ;;  %3004 = vmatpush1.bf16.msra.mxu1 %v3692_v26 }
 0x271   : > { %2974 = vmatprep.subr.bf16.mxu0 %v3694_v27  ;;  %3006 = vmatprep.subr.bf16.mxu1 %v3700_v31 }
 0x274   : > { %2976 = vmatpush1.bf16.msra.mxu0 %v3713_v39  ;;  %3008 = vmatpush1.bf16.msra.mxu1 %v3717_v40 }
 0x275   : > { %2978 = vmatprep.subr.bf16.mxu0 %v3719_v42  ;;  %3010 = vmatprep.subr.bf16.mxu1 %v3725_v46 }
 0x278   : > { %2980 = vmatpush1.bf16.msra.mxu0 %v3738_v57  ;;  %3012 = vmatpush1.bf16.msra.mxu1 %v3742_v58 }
 0x279   : > { %2982 = vmatprep.subr.bf16.mxu0 %v3744_v59  ;;  %3014 = vmatprep.subr.bf16.mxu1 %v3750_v3 }
 0x27c   : > { %2984 = vmatpush1.bf16.msra.mxu0 %v3763_v11  ;;  %3016 = vmatpush1.bf16.msra.mxu1 %v3767_v15 }
 0x27d   : > { %2986 = vmatprep.subr.bf16.mxu0 %v3769_v16  ;;  %3018 = vmatprep.subr.bf16.mxu1 %v3774_v20 }
 0x280   : > { %2988 = vmatpush1.bf16.msra.mxu0 %v3784_v24  ;;  %3020 = vmatpush1.bf16.msra.mxu1 %v3788_v28 }
 0x281   : > { %3022 = vmatprep.subr.bf16.mxu0 %v3599_v38  ;;  %3054 = vmatprep.subr.bf16.mxu1 %v3603_v41 }
 0x336   : > { %v1288_v7 = vpop.f32.mrb[20].mxu0  ;;  %v1359_v43 = vpop.f32.mrb[20].mxu1 }
 0x337   : > { %v1364_v44 = vadd.f32 %v1288_v7, %v1218_v61  ;;  %v1290_v19 = vpop.f32.mrb[21].mxu0  ;;  %v1361_v45 = vpop.f32.mrb[21].mxu1  ;;  %v1366_v34 = vadd.f32 %v1359_v43, %v1220_v32  ;;  %v1411_v32 = vld [vmem:[%s1407_s30 + $0x18] sm:$0xff] }
 0x338   : > { %v1365_v21 = vadd.f32 %v1290_v19, %v1219_v17  ;;  %v1367_v30 = vadd.f32 %v1361_v45, %v1221_v29  ;;  %v1409_v45 = vld [vmem:[%s1407_s30 + $0x8] sm:$0xff] }
 0x339   : > { %v2626_v22 = vmul.f32 -1.442695, %v1364_v44 }
 0x33a   : > { %v2627_v23 = vmul.f32 -1.442695, %v1365_v21  ;;  %v2628_v33 = vmul.f32 -1.442695, %v1367_v30 }
 0x33b   : > { %3334 = vpow2.f32 %v2626_v22 }
 0x33c   : > { %3336 = vpow2.f32 %v2627_v23 }
 0x33d   : > { %3338 = vpow2.f32 %v2628_v33 }
 0x33e   : > { %3340 = vtanh.f32 %v1366_v34  ;;  %v1410_v34 = vld [vmem:[%s1407_s30 + $0x10] sm:$0xff] }
 0x345   : > { %v3335_v35 = vpop.eup %3334 }
 0x346   : > { %v3337_v36 = vpop.eup %3336  ;;  %v1371_v47 = vadd.f32 1.0, %v3335_v35 }
 0x347   : > { %v1377_v48 = vadd.f32 1.0, %v3337_v36  ;;  %v3339_v52 = vpop.eup %3338 }
 0x348   : > { %3342 = vrcp.f32 %v1371_v47  ;;  %v3341_v53 = vpop.eup %3340  ;;  %v1384_v4 = vadd.f32 1.0, %v3339_v52 }
 0x349   : > { %3344 = vrcp.f32 %v1377_v48 }
 0x34a   : > { %3346 = vrcp.f32 %v1384_v4 }
 0x352   : > { %v3343_v54 = vpop.eup %3342 }
 0x353   : > { %v3345_v60 = vpop.eup %3344  ;;  %v1388_v2 = vmul.f32 %v3343_v54, %v3341_v53 }
 0x354   : > { %v1387_v8 = vmul.f32 %v3345_v60, %v3935_v6  ;;  %v3347_v61 = vpop.eup %3346 }
 0x356   : > { %v1389_v37 = vadd.f32 %v1388_v2, %v1387_v8  ;;  %v1585_v2 = vstv %s1584_s8  ;;  %s2697_s8 = smul.u32 4294967256, %s3444_s21 }
 0x357   : > { %vm1586_vm3 = vcmp.eq.s32.totalorder %v1585_v2, 1 }
 0x358   : > { %3348 = vtanh.f32 %v1389_v37  ;;  %v3986_v9 = vsel %vm1396_vm2, %v1389_v37, %v3935_v6  ;;  %v1408_v6 = vld [vmem:[%s1407_s30] sm:$0xff]  ;;  %s1965_s30 = scalar_select %p1964_p10, 1, 0 }
 0x362   : > { %v3349_v7 = vpop.eup %3348 }
 0x363   : > { %v1391_v43 = vmul.f32 %v3349_v7, %v3347_v61 }
 0x365   : > { %v3992_v44 = vsel %vm1396_vm2, %v1391_v43, %v3941_v10 }
 0x366   : > { %2630 = vst [vmem:[%s2483_s20 + $0x10] sm:$0xff] %v3992_v44  ;;  %1477 = vmatmul.mubr.f32.vlgmr.msra.gmra.mrb[22].mxu0 %v3992_v44  ;;  %1548 = vmatmul.mubr.f32.vlgmr.msra.gmra.mrb[22].mxu1 %v3992_v44  ;;  %s1784_s20 = sshra.s32 %s2686_s18, 3  ;;  %s2692_s18 = sadd.s32 56, %s2698_s17 }
 0x367   : > { %3024 = vmatpush1.bf16.msra.mxu0 %v3615_v49  ;;  %3056 = vmatpush1.bf16.msra.mxu1 %v3618_v50  ;;  %s2687_s26 = sshll.u32 %s1784_s20, 5  ;;  %s2166_s20 = sshra.s32 %s2692_s18, 3 }
 0x368   : > { %3026 = vmatprep.subr.bf16.mxu0 %v3620_v51  ;;  %3058 = vmatprep.subr.bf16.mxu1 %v3625_v55  ;;  %s1788_s27 = scalar_lea.vmem [#allocation2], %s2687_s26  ;;  %s2693_s26 = sshll.u32 %s2166_s20, 5 }
 0x369   : > { %1666 = vmatprep.mubr.f32.mxu0 %v3454_v0  ;;  %1737 = vmatprep.mubr.f32.mxu1 %v3454_v0 }
 0x36b   : > { %3028 = vmatpush1.bf16.msra.mxu0 %v3638_v62  ;;  %3060 = vmatpush1.bf16.msra.mxu1 %v3642_v63 }
 0x36c   : > { %3030 = vmatprep.subr.bf16.mxu0 %v3644_v1  ;;  %3062 = vmatprep.subr.bf16.mxu1 %v3650_v5 }
 0x36f   : > { %3032 = vmatpush1.bf16.msra.mxu0 %v3663_v12  ;;  %3064 = vmatpush1.bf16.msra.mxu1 %v3667_v13 }
 0x370   : > { %3034 = vmatprep.subr.bf16.mxu0 %v3669_v14  ;;  %3066 = vmatprep.subr.bf16.mxu1 %v3675_v18 }
 0x373   : > { %3036 = vmatpush1.bf16.msra.mxu0 %v3688_v25  ;;  %3068 = vmatpush1.bf16.msra.mxu1 %v3692_v26 }
 0x374   : > { %3038 = vmatprep.subr.bf16.mxu0 %v3694_v27  ;;  %3070 = vmatprep.subr.bf16.mxu1 %v3700_v31 }
 0x377   : > { %3040 = vmatpush1.bf16.msra.mxu0 %v3713_v39  ;;  %3072 = vmatpush1.bf16.msra.mxu1 %v3717_v40 }
 0x378   : > { %3042 = vmatprep.subr.bf16.mxu0 %v3719_v42  ;;  %3074 = vmatprep.subr.bf16.mxu1 %v3725_v46 }
 0x37b   : > { %3044 = vmatpush1.bf16.msra.mxu0 %v3738_v57  ;;  %3076 = vmatpush1.bf16.msra.mxu1 %v3742_v58 }
 0x37c   : > { %3046 = vmatprep.subr.bf16.mxu0 %v3744_v59  ;;  %3078 = vmatprep.subr.bf16.mxu1 %v3750_v3 }
 0x37f   : > { %3048 = vmatpush1.bf16.msra.mxu0 %v3763_v11  ;;  %3080 = vmatpush1.bf16.msra.mxu1 %v3767_v15 }
 0x380   : > { %3050 = vmatprep.subr.bf16.mxu0 %v3769_v16  ;;  %3082 = vmatprep.subr.bf16.mxu1 %v3774_v20 }
 0x383   : > { %3052 = vmatpush1.bf16.msra.mxu0 %v3784_v24  ;;  %3084 = vmatpush1.bf16.msra.mxu1 %v3788_v28 }
 0x384   : > { %3086 = vmatprep.subr.bf16.mxu0 %v3599_v38  ;;  %3118 = vmatprep.subr.bf16.mxu1 %v3603_v41 }
 0x439   : > { %v1478_v10 = vpop.f32.mrb[22].mxu0  ;;  %v1549_v17 = vpop.f32.mrb[22].mxu1 }
 0x43a   : > { %v1554_v19 = vadd.f32 %v1478_v10, %v1408_v6  ;;  %v1480_v21 = vpop.f32.mrb[23].mxu0  ;;  %v1551_v22 = vpop.f32.mrb[23].mxu1  ;;  %v1556_v36 = vadd.f32 %v1549_v17, %v1410_v34  ;;  %v1601_v34 = vld [vmem:[%s1597_s14 + $0x18] sm:$0xff] }
 0x43b   : > { %v1555_v23 = vadd.f32 %v1480_v21, %v1409_v45  ;;  %v1557_v33 = vadd.f32 %v1551_v22, %v1411_v32  ;;  %v1599_v22 = vld [vmem:[%s1597_s14 + $0x8] sm:$0xff] }
 0x43c   : > { %v2634_v29 = vmul.f32 -1.442695, %v1554_v19 }
 0x43d   : > { %v2635_v30 = vmul.f32 -1.442695, %v1555_v23  ;;  %v2636_v35 = vmul.f32 -1.442695, %v1557_v33 }
 0x43e   : > { %3350 = vpow2.f32 %v2634_v29 }
 0x43f   : > { %3352 = vpow2.f32 %v2635_v30 }
 0x440   : > { %3354 = vpow2.f32 %v2636_v35 }
 0x441   : > { %3356 = vtanh.f32 %v1556_v36  ;;  %v1600_v36 = vld [vmem:[%s1597_s14 + $0x10] sm:$0xff] }
 0x448   : > { %v3351_v47 = vpop.eup %3350 }
 0x449   : > { %v3353_v48 = vpop.eup %3352  ;;  %v1561_v52 = vadd.f32 1.0, %v3351_v47 }
 0x44a   : > { %v1567_v53 = vadd.f32 1.0, %v3353_v48  ;;  %v3355_v54 = vpop.eup %3354 }
 0x44b   : > { %3358 = vrcp.f32 %v1561_v52  ;;  %v3357_v56 = vpop.eup %3356  ;;  %v1574_v37 = vadd.f32 1.0, %v3355_v54 }
 0x44c   : > { %3360 = vrcp.f32 %v1567_v53 }
 0x44d   : > { %3362 = vrcp.f32 %v1574_v37 }
 0x455   : > { %v3359_v60 = vpop.eup %3358 }
 0x456   : > { %v3361_v4 = vpop.eup %3360  ;;  %v1578_v8 = vmul.f32 %v3359_v60, %v3357_v56 }
 0x457   : > { %v1577_v61 = vmul.f32 %v3361_v4, %v3986_v9  ;;  %v3363_v6 = vpop.eup %3362 }
 0x459   : > { %v1579_v7 = vadd.f32 %v1578_v8, %v1577_v61  ;;  %v1775_v8 = vstv %s1774_s15 }
 0x45a   : > { %vm1776_vm4 = vcmp.eq.s32.totalorder %v1775_v8, 1  ;;  %v1966_v8 = vstv %s1965_s30  ;;  %s2347_s30 = scalar_select %p2346_p12, 1, 0 }
 0x45b   : > { %3364 = vtanh.f32 %v1579_v7  ;;  %v4037_v43 = vsel %vm1586_vm3, %v1579_v7, %v3986_v9  ;;  %v1598_v9 = vld [vmem:[%s1597_s14] sm:$0xff]  ;;  %vm1967_vm5 = vcmp.eq.s32.totalorder %v1966_v8, 1  ;;  %s1973_s14 = sadd.s32 6, %s1972_s13 }
 0x45c   : > { %p2155_p11 = scmp.lt.s32.totalorder %s1973_s14, 8 }
 0x45e   : > { %s2156_s15 = scalar_select %p2155_p11, 1, 0 }
 0x465   : > { %v3365_v10 = vpop.eup %3364 }
 0x466   : > { %v1581_v17 = vmul.f32 %v3365_v10, %v3363_v6 }
 0x468   : > { %v4043_v19 = vsel %vm1586_vm3, %v1581_v17, %v3992_v44 }
 0x469   : > { %2638 = vst [vmem:[%s2488_s9 + $0x18] sm:$0xff] %v4043_v19  ;;  %1667 = vmatmul.mubr.f32.vlgmr.msra.gmra.mrb[24].mxu0 %v4043_v19  ;;  %1738 = vmatmul.mubr.f32.vlgmr.msra.gmra.mrb[24].mxu1 %v4043_v19  ;;  %s2689_s9 = sadd.s32 48, %s2697_s8 }
 0x46a   : > { %3088 = vmatpush1.bf16.msra.mxu0 %v3615_v49  ;;  %3120 = vmatpush1.bf16.msra.mxu1 %v3618_v50  ;;  %s1975_s10 = sshra.s32 %s2689_s9, 3 }
 0x46b   : > { %3090 = vmatprep.subr.bf16.mxu0 %v3620_v51  ;;  %3122 = vmatprep.subr.bf16.mxu1 %v3625_v55  ;;  %s2690_s11 = sshll.u32 %s1975_s10, 5 }
 0x46c   : > { %1857 = vmatprep.mubr.f32.mxu0 %v3454_v0  ;;  %1928 = vmatprep.mubr.f32.mxu1 %v3454_v0  ;;  %s1979_s12 = scalar_lea.vmem [#allocation2], %s2690_s11  ;;  %s2510_s11 = scalar_lea.vmem %s3887_s19, %s2698_s17 }
 0x46e   : > { %3092 = vmatpush1.bf16.msra.mxu0 %v3638_v62  ;;  %3124 = vmatpush1.bf16.msra.mxu1 %v3642_v63 }
 0x46f   : > { %3094 = vmatprep.subr.bf16.mxu0 %v3644_v1  ;;  %3126 = vmatprep.subr.bf16.mxu1 %v3650_v5 }
 0x472   : > { %3096 = vmatpush1.bf16.msra.mxu0 %v3663_v12  ;;  %3128 = vmatpush1.bf16.msra.mxu1 %v3667_v13 }
 0x473   : > { %3098 = vmatprep.subr.bf16.mxu0 %v3669_v14  ;;  %3130 = vmatprep.subr.bf16.mxu1 %v3675_v18 }
 0x476   : > { %3100 = vmatpush1.bf16.msra.mxu0 %v3688_v25  ;;  %3132 = vmatpush1.bf16.msra.mxu1 %v3692_v26 }
 0x477   : > { %3102 = vmatprep.subr.bf16.mxu0 %v3694_v27  ;;  %3134 = vmatprep.subr.bf16.mxu1 %v3700_v31 }
 0x47a   : > { %3104 = vmatpush1.bf16.msra.mxu0 %v3713_v39  ;;  %3136 = vmatpush1.bf16.msra.mxu1 %v3717_v40 }
 0x47b   : > { %3106 = vmatprep.subr.bf16.mxu0 %v3719_v42  ;;  %3138 = vmatprep.subr.bf16.mxu1 %v3725_v46 }
 0x47e   : > { %3108 = vmatpush1.bf16.msra.mxu0 %v3738_v57  ;;  %3140 = vmatpush1.bf16.msra.mxu1 %v3742_v58 }
 0x47f   : > { %3110 = vmatprep.subr.bf16.mxu0 %v3744_v59  ;;  %3142 = vmatprep.subr.bf16.mxu1 %v3750_v3 }
 0x482   : > { %3112 = vmatpush1.bf16.msra.mxu0 %v3763_v11  ;;  %3144 = vmatpush1.bf16.msra.mxu1 %v3767_v15 }
 0x483   : > { %3114 = vmatprep.subr.bf16.mxu0 %v3769_v16  ;;  %3146 = vmatprep.subr.bf16.mxu1 %v3774_v20 }
 0x486   : > { %3116 = vmatpush1.bf16.msra.mxu0 %v3784_v24  ;;  %3148 = vmatpush1.bf16.msra.mxu1 %v3788_v28 }
 0x487   : > { %3150 = vmatprep.subr.bf16.mxu0 %v3599_v38  ;;  %3182 = vmatprep.subr.bf16.mxu1 %v3603_v41 }
 0x53c   : > { %v1668_v44 = vpop.f32.mrb[24].mxu0  ;;  %v1739_v45 = vpop.f32.mrb[24].mxu1 }
 0x53d   : > { %v1744_v21 = vadd.f32 %v1668_v44, %v1598_v9  ;;  %v1670_v23 = vpop.f32.mrb[25].mxu0  ;;  %v1741_v29 = vpop.f32.mrb[25].mxu1  ;;  %v1746_v48 = vadd.f32 %v1739_v45, %v1600_v36  ;;  %v1791_v36 = vld [vmem:[%s1788_s27 + $0x10] sm:$0xff] }
 0x53e   : > { %v1745_v30 = vadd.f32 %v1670_v23, %v1599_v22  ;;  %v1747_v35 = vadd.f32 %v1741_v29, %v1601_v34  ;;  %v1790_v29 = vld [vmem:[%s1788_s27 + $0x8] sm:$0xff] }
 0x53f   : > { %v2642_v32 = vmul.f32 -1.442695, %v1744_v21 }
 0x540   : > { %v2643_v33 = vmul.f32 -1.442695, %v1745_v30  ;;  %v2644_v47 = vmul.f32 -1.442695, %v1747_v35 }
 0x541   : > { %3366 = vpow2.f32 %v2642_v32 }
 0x542   : > { %3368 = vpow2.f32 %v2643_v33 }
 0x543   : > { %3370 = vpow2.f32 %v2644_v47 }
 0x544   : > { %3372 = vtanh.f32 %v1746_v48 }
 0x54b   : > { %v3367_v52 = vpop.eup %3366 }
 0x54c   : > { %v3369_v53 = vpop.eup %3368  ;;  %v1751_v54 = vadd.f32 1.0, %v3367_v52 }
 0x54d   : > { %v1757_v56 = vadd.f32 1.0, %v3369_v53  ;;  %v3371_v60 = vpop.eup %3370 }
 0x54e   : > { %3374 = vrcp.f32 %v1751_v54  ;;  %v3373_v2 = vpop.eup %3372  ;;  %v1764_v7 = vadd.f32 1.0, %v3371_v60 }
 0x54f   : > { %3376 = vrcp.f32 %v1757_v56 }
 0x550   : > { %3378 = vrcp.f32 %v1764_v7 }
 0x558   : > { %v3375_v4 = vpop.eup %3374 }
 0x559   : > { %v3377_v37 = vpop.eup %3376  ;;  %v1768_v61 = vmul.f32 %v3375_v4, %v3373_v2 }
 0x55a   : > { %v1767_v6 = vmul.f32 %v3377_v37, %v4037_v43  ;;  %v3379_v9 = vpop.eup %3378 }
 0x55c   : > { %v1769_v10 = vadd.f32 %v1768_v61, %v1767_v6 }
 0x55e   : > { %3380 = vtanh.f32 %v1769_v10  ;;  %v4088_v17 = vsel %vm1776_vm4, %v1769_v10, %v4037_v43  ;;  %v1789_v43 = vld [vmem:[%s1788_s27] sm:$0xff] }
 0x568   : > { %v3381_v44 = vpop.eup %3380 }
 0x569   : > { %v1771_v45 = vmul.f32 %v3381_v44, %v3379_v9 }
 0x56b   : > { %v4093_v21 = vsel %vm1776_vm4, %v1771_v45, %v4043_v19 }
 0x56c   : > { %1780 = vst [vmem:[%s1779_s16] sm:$0xff] %v4093_v21  ;;  %1858 = vmatmul.mubr.f32.vlgmr.msra.gmra.mrb[26].mxu0 %v4093_v21  ;;  %1929 = vmatmul.mubr.f32.vlgmr.msra.gmra.mrb[26].mxu1 %v4093_v21  ;;  %s2504_s16 = scalar_lea.vmem %s3887_s19, %s2697_s8 }
 0x56d   : > { %3152 = vmatpush1.bf16.msra.mxu0 %v3615_v49  ;;  %3184 = vmatpush1.bf16.msra.mxu1 %v3618_v50 }
 0x56e   : > { %3154 = vmatprep.subr.bf16.mxu0 %v3620_v51  ;;  %3186 = vmatprep.subr.bf16.mxu1 %v3625_v55 }
 0x56f   : > { %2048 = vmatprep.mubr.f32.mxu0 %v3454_v0  ;;  %2119 = vmatprep.mubr.f32.mxu1 %v3454_v0 }
 0x571   : > { %3156 = vmatpush1.bf16.msra.mxu0 %v3638_v62  ;;  %3188 = vmatpush1.bf16.msra.mxu1 %v3642_v63 }
 0x572   : > { %3158 = vmatprep.subr.bf16.mxu0 %v3644_v1  ;;  %3190 = vmatprep.subr.bf16.mxu1 %v3650_v5 }
 0x575   : > { %3160 = vmatpush1.bf16.msra.mxu0 %v3663_v12  ;;  %3192 = vmatpush1.bf16.msra.mxu1 %v3667_v13 }
 0x576   : > { %3162 = vmatprep.subr.bf16.mxu0 %v3669_v14  ;;  %3194 = vmatprep.subr.bf16.mxu1 %v3675_v18 }
 0x579   : > { %3164 = vmatpush1.bf16.msra.mxu0 %v3688_v25  ;;  %3196 = vmatpush1.bf16.msra.mxu1 %v3692_v26 }
 0x57a   : > { %3166 = vmatprep.subr.bf16.mxu0 %v3694_v27  ;;  %3198 = vmatprep.subr.bf16.mxu1 %v3700_v31 }
 0x57d   : > { %3168 = vmatpush1.bf16.msra.mxu0 %v3713_v39  ;;  %3200 = vmatpush1.bf16.msra.mxu1 %v3717_v40 }
 0x57e   : > { %3170 = vmatprep.subr.bf16.mxu0 %v3719_v42  ;;  %3202 = vmatprep.subr.bf16.mxu1 %v3725_v46 }
 0x581   : > { %3172 = vmatpush1.bf16.msra.mxu0 %v3738_v57  ;;  %3204 = vmatpush1.bf16.msra.mxu1 %v3742_v58 }
 0x582   : > { %3174 = vmatprep.subr.bf16.mxu0 %v3744_v59  ;;  %3206 = vmatprep.subr.bf16.mxu1 %v3750_v3 }
 0x585   : > { %3176 = vmatpush1.bf16.msra.mxu0 %v3763_v11  ;;  %3208 = vmatpush1.bf16.msra.mxu1 %v3767_v15 }
 0x586   : > { %3178 = vmatprep.subr.bf16.mxu0 %v3769_v16  ;;  %3210 = vmatprep.subr.bf16.mxu1 %v3774_v20 }
 0x589   : > { %3180 = vmatpush1.bf16.msra.mxu0 %v3784_v24  ;;  %3212 = vmatpush1.bf16.msra.mxu1 %v3788_v28 }
 0x58a   : > { %3214 = vmatprep.subr.bf16.mxu0 %v3599_v38  ;;  %3246 = vmatprep.subr.bf16.mxu1 %v3603_v41  ;;  %v1792_v38 = vld [vmem:[%s1788_s27 + $0x18] sm:$0xff]  ;;  %s2170_s27 = scalar_lea.vmem [#allocation2], %s2693_s26 }
 0x63f   : > { %v1859_v19 = vpop.f32.mrb[26].mxu0  ;;  %v1930_v22 = vpop.f32.mrb[26].mxu1 }
 0x640   : > { %v1935_v23 = vadd.f32 %v1859_v19, %v1789_v43  ;;  %v1861_v30 = vpop.f32.mrb[27].mxu0  ;;  %v1932_v32 = vpop.f32.mrb[27].mxu1  ;;  %v1937_v48 = vadd.f32 %v1930_v22, %v1791_v36  ;;  %v2171_v22 = vld [vmem:[%s2170_s27] sm:$0xff]  ;;  %v2174_v36 = vld [vmem:[%s2170_s27 + $0x18] sm:$0xff] }
 0x641   : > { %v1936_v33 = vadd.f32 %v1861_v30, %v1790_v29  ;;  %v1938_v41 = vadd.f32 %v1932_v32, %v1792_v38  ;;  %v2172_v32 = vld [vmem:[%s2170_s27 + $0x8] sm:$0xff] }
 0x642   : > { %v2648_v34 = vmul.f32 -1.442695, %v1935_v23 }
 0x643   : > { %v2649_v35 = vmul.f32 -1.442695, %v1936_v33  ;;  %v2650_v47 = vmul.f32 -1.442695, %v1938_v41 }
 0x644   : > { %3382 = vpow2.f32 %v2648_v34 }
 0x645   : > { %3384 = vpow2.f32 %v2649_v35 }
 0x646   : > { %3386 = vpow2.f32 %v2650_v47 }
 0x647   : > { %3388 = vtanh.f32 %v1937_v48  ;;  %v2173_v48 = vld [vmem:[%s2170_s27 + $0x10] sm:$0xff] }
 0x64e   : > { %v3383_v52 = vpop.eup %3382 }
 0x64f   : > { %v3385_v53 = vpop.eup %3384  ;;  %v1942_v54 = vadd.f32 1.0, %v3383_v52 }
 0x650   : > { %v1948_v56 = vadd.f32 1.0, %v3385_v53  ;;  %v3387_v60 = vpop.eup %3386 }
 0x651   : > { %3390 = vrcp.f32 %v1942_v54  ;;  %v3389_v2 = vpop.eup %3388  ;;  %v1955_v7 = vadd.f32 1.0, %v3387_v60 }
 0x652   : > { %3392 = vrcp.f32 %v1948_v56 }
 0x653   : > { %3394 = vrcp.f32 %v1955_v7 }
 0x65b   : > { %v3391_v4 = vpop.eup %3390 }
 0x65c   : > { %v3393_v37 = vpop.eup %3392  ;;  %v1959_v61 = vmul.f32 %v3391_v4, %v3389_v2 }
 0x65d   : > { %v1958_v6 = vmul.f32 %v3393_v37, %v4088_v17  ;;  %v3395_v44 = vpop.eup %3394 }
 0x65f   : > { %v1960_v10 = vadd.f32 %v1959_v61, %v1958_v6  ;;  %v2348_v61 = vstv %s2347_s30 }
 0x660   : > { %vm2349_vm7 = vcmp.eq.s32.totalorder %v2348_v61, 1 }
 0x661   : > { %3396 = vtanh.f32 %v1960_v10  ;;  %v4138_v9 = vsel %vm1967_vm5, %v1960_v10, %v4088_v17 }
 0x66b   : > { %v3397_v45 = vpop.eup %3396 }
 0x66c   : > { %v1962_v43 = vmul.f32 %v3397_v45, %v3395_v44 }
 0x66e   : > { %v4144_v19 = vsel %vm1967_vm5, %v1962_v43, %v4093_v21 }
 0x66f   : > { %2652 = vst [vmem:[%s2498_s7 + $0x28] sm:$0xff] %v4144_v19  ;;  %2049 = vmatmul.mubr.f32.vlgmr.msra.gmra.mrb[28].mxu0 %v4144_v19  ;;  %2120 = vmatmul.mubr.f32.vlgmr.msra.gmra.mrb[28].mxu1 %v4144_v19  ;;  %s2608_s7 = sshll.u32 %s3514_s25, 3 }
 0x670   : > { %3216 = vmatpush1.bf16.msra.mxu0 %v3615_v49  ;;  %3248 = vmatpush1.bf16.msra.mxu1 %v3618_v50  ;;  %s399_s10 = scalar_lea.vmem %s4220_s6, %s2608_s7  ;;  %s395_s25 = scalar_lea.vmem %s4219_s5, %s2608_s7 }
 0x671   : > { %3218 = vmatprep.subr.bf16.mxu0 %v3620_v51  ;;  %3250 = vmatprep.subr.bf16.mxu1 %v3625_v55  ;;  %v1981_v55 = vld [vmem:[%s1979_s12 + $0x8] sm:$0xff] }
 0x672   : > { %2239 = vmatprep.mubr.f32.mxu0 %v3454_v0  ;;  %2310 = vmatprep.mubr.f32.mxu1 %v3454_v0  ;;  %v1980_v0 = vld [vmem:[%s1979_s12] sm:$0xff] }
 0x674   : > { %3220 = vmatpush1.bf16.msra.mxu0 %v3638_v62  ;;  %3252 = vmatpush1.bf16.msra.mxu1 %v3642_v63 }
 0x675   : > { %3222 = vmatprep.subr.bf16.mxu0 %v3644_v1  ;;  %3254 = vmatprep.subr.bf16.mxu1 %v3650_v5 }
 0x678   : > { %3224 = vmatpush1.bf16.msra.mxu0 %v3663_v12  ;;  %3256 = vmatpush1.bf16.msra.mxu1 %v3667_v13  ;;  %v1983_v13 = vld [vmem:[%s1979_s12 + $0x18] sm:$0xff] }
 0x679   : > { %3226 = vmatprep.subr.bf16.mxu0 %v3669_v14  ;;  %3258 = vmatprep.subr.bf16.mxu1 %v3675_v18  ;;  %v1982_v18 = vld [vmem:[%s1979_s12 + $0x10] sm:$0xff] }
 0x67c   : > { %3228 = vmatpush1.bf16.msra.mxu0 %v3688_v25  ;;  %3260 = vmatpush1.bf16.msra.mxu1 %v3692_v26 }
 0x67d   : > { %3230 = vmatprep.subr.bf16.mxu0 %v3694_v27  ;;  %3262 = vmatprep.subr.bf16.mxu1 %v3700_v31 }
 0x680   : > { %3232 = vmatpush1.bf16.msra.mxu0 %v3713_v39  ;;  %3264 = vmatpush1.bf16.msra.mxu1 %v3717_v40 }
 0x681   : > { %3234 = vmatprep.subr.bf16.mxu0 %v3719_v42  ;;  %3266 = vmatprep.subr.bf16.mxu1 %v3725_v46 }
 0x684   : > { %3236 = vmatpush1.bf16.msra.mxu0 %v3738_v57  ;;  %3268 = vmatpush1.bf16.msra.mxu1 %v3742_v58  ;;  %v2157_v58 = vstv %s2156_s15 }
 0x685   : > { %3238 = vmatprep.subr.bf16.mxu0 %v3744_v59  ;;  %3270 = vmatprep.subr.bf16.mxu1 %v3750_v3  ;;  %vm2158_vm6 = vcmp.eq.s32.totalorder %v2157_v58, 1 }
 0x688   : > { %3240 = vmatpush1.bf16.msra.mxu0 %v3763_v11  ;;  %3272 = vmatpush1.bf16.msra.mxu1 %v3767_v15 }
 0x689   : > { %3242 = vmatprep.subr.bf16.mxu0 %v3769_v16  ;;  %3274 = vmatprep.subr.bf16.mxu1 %v3774_v20 }
 0x68c   : > { %3244 = vmatpush1.bf16.msra.mxu0 %v3784_v24  ;;  %3276 = vmatpush1.bf16.msra.mxu1 %v3788_v28 }
 0x742   : > { %v2050_v49 = vpop.f32.mrb[28].mxu0  ;;  %v2121_v50 = vpop.f32.mrb[28].mxu1 }
 0x743   : > { %v2126_v51 = vadd.f32 %v2050_v49, %v1980_v0  ;;  %v2052_v62 = vpop.f32.mrb[29].mxu0  ;;  %v2123_v63 = vpop.f32.mrb[29].mxu1  ;;  %v2128_v26 = vadd.f32 %v2121_v50, %v1982_v18 }
 0x744   : > { %v2127_v1 = vadd.f32 %v2052_v62, %v1981_v55  ;;  %v2129_v14 = vadd.f32 %v2123_v63, %v1983_v13 }
 0x745   : > { %v2656_v5 = vmul.f32 -1.442695, %v2126_v51 }
 0x746   : > { %v2657_v12 = vmul.f32 -1.442695, %v2127_v1  ;;  %v2658_v25 = vmul.f32 -1.442695, %v2129_v14 }
 0x747   : > { %3398 = vpow2.f32 %v2656_v5 }
 0x748   : > { %3400 = vpow2.f32 %v2657_v12 }
 0x749   : > { %3402 = vpow2.f32 %v2658_v25 }
 0x74a   : > { %3404 = vtanh.f32 %v2128_v26 }
 0x751   : > { %v3399_v27 = vpop.eup %3398 }
 0x752   : > { %v3401_v31 = vpop.eup %3400  ;;  %v2133_v39 = vadd.f32 1.0, %v3399_v27 }
 0x753   : > { %v2139_v40 = vadd.f32 1.0, %v3401_v31  ;;  %v3403_v42 = vpop.eup %3402 }
 0x754   : > { %3406 = vrcp.f32 %v2133_v39  ;;  %v3405_v46 = vpop.eup %3404  ;;  %v2146_v11 = vadd.f32 1.0, %v3403_v42 }
 0x755   : > { %3408 = vrcp.f32 %v2139_v40 }
 0x756   : > { %3410 = vrcp.f32 %v2146_v11 }
 0x75e   : > { %v3407_v57 = vpop.eup %3406 }
 0x75f   : > { %v3409_v59 = vpop.eup %3408  ;;  %v2150_v3 = vmul.f32 %v3407_v57, %v3405_v46 }
 0x760   : > { %v2149_v15 = vmul.f32 %v3409_v59, %v4138_v9  ;;  %v3411_v24 = vpop.eup %3410 }
 0x762   : > { %v2151_v16 = vadd.f32 %v2150_v3, %v2149_v15 }
 0x764   : > { %3412 = vtanh.f32 %v2151_v16  ;;  %v2159_v20 = vsel %vm2158_vm6, %v2151_v16, %v4138_v9 }
 0x76e   : > { %v3413_v28 = vpop.eup %3412 }
 0x76f   : > { %v2153_v17 = vmul.f32 %v3413_v28, %v3411_v24 }
 0x771   : > { %v2160_v21 = vsel %vm2158_vm6, %v2153_v17, %v4144_v19 }
 0x772   : > { %2660 = vst [vmem:[%s2504_s16 + $0x30] sm:$0xff] %v2160_v21  ;;  %2240 = vmatmul.mubr.f32.vlgmr.msra.gmra.mrb[30].mxu0 %v2160_v21  ;;  %2311 = vmatmul.mubr.f32.vlgmr.msra.gmra.mrb[30].mxu1 %v2160_v21 }
 0x845   : > { %v2241_v23 = vpop.f32.mrb[30].mxu0  ;;  %v2312_v29 = vpop.f32.mrb[30].mxu1 }
 0x846   : > { %v2317_v30 = vadd.f32 %v2241_v23, %v2171_v22  ;;  %v2243_v33 = vpop.f32.mrb[31].mxu0  ;;  %v2314_v34 = vpop.f32.mrb[31].mxu1  ;;  %v2319_v53 = vadd.f32 %v2312_v29, %v2173_v48 }
 0x847   : > { %v2318_v35 = vadd.f32 %v2243_v33, %v2172_v32  ;;  %v2320_v47 = vadd.f32 %v2314_v34, %v2174_v36 }
 0x848   : > { %v2664_v38 = vmul.f32 -1.442695, %v2317_v30 }
 0x849   : > { %v2665_v41 = vmul.f32 -1.442695, %v2318_v35  ;;  %v2666_v52 = vmul.f32 -1.442695, %v2320_v47 }
 0x84a   : > { %3414 = vpow2.f32 %v2664_v38 }
 0x84b   : > { %3416 = vpow2.f32 %v2665_v41 }
 0x84c   : > { %3418 = vpow2.f32 %v2666_v52 }
 0x84d   : > { %3420 = vtanh.f32 %v2319_v53 }
 0x854   : > { %v3415_v54 = vpop.eup %3414 }
 0x855   : > { %v3417_v56 = vpop.eup %3416  ;;  %v2324_v60 = vadd.f32 1.0, %v3415_v54 }
 0x856   : > { %v2330_v2 = vadd.f32 1.0, %v3417_v56  ;;  %v3419_v4 = vpop.eup %3418 }
 0x857   : > { %3422 = vrcp.f32 %v2324_v60  ;;  %v3421_v8 = vpop.eup %3420  ;;  %v2337_v10 = vadd.f32 1.0, %v3419_v4 }
 0x858   : > { %3424 = vrcp.f32 %v2330_v2 }
 0x859   : > { %3426 = vrcp.f32 %v2337_v10 }
 0x861   : > { %v3423_v37 = vpop.eup %3422 }
 0x862   : > { %v3425_v7 = vpop.eup %3424  ;;  %v2341_v6 = vmul.f32 %v3423_v37, %v3421_v8 }
 0x863   : > { %v2340_v9 = vmul.f32 %v3425_v7, %v2159_v20  ;;  %v3427_v43 = vpop.eup %3426 }
 0x865   : > { %v2342_v44 = vadd.f32 %v2341_v6, %v2340_v9 }
 0x867   : > { %3428 = vtanh.f32 %v2342_v44  ;;  %v2350_v45 = vsel %vm2349_vm7, %v2342_v44, %v2159_v20 }
 0x868   : > { %2357 = vst [vmem:[%s399_s10] sm:$0xff] %v2350_v45 }
 0x871   : > { %v3429_v19 = vpop.eup %3428 }
 0x872   : > { %v2344_v0 = vmul.f32 %v3429_v19, %v3427_v43 }
 0x874   : > { %v2351_v49 = vsel %vm2349_vm7, %v2344_v0, %v2160_v21 }
 0x875   : > { %2668 = vst [vmem:[%s2510_s11 + $0x38] sm:$0xff] %v2351_v49  ;;  %2356 = vst [vmem:[%s395_s25] sm:$0xff] %v2351_v49 }
 0x876 PF: > { %s17_s23 = sadd.s32 1, %s3452_s23   ;;  %s4221_s21 = smov %s3448_s22 }
 0x877   : > { %p14_p13 = scmp.ge.s32.totalorder %s17_s23, 4   ;;  %s4222_s22 = smov %s4224_s24 }
 0x879   :  { %16 = sbr.rel (!%p14_p13) target bundleno = 2 (0x2), region = 119 }

</bundles_post_ra>
